<compile_context>
chip_gen: v6e
topology: v6e:2x2x1
jax: 0.10.0
libtpu: 0.0.40
codegen_flags: <defaults>
</compile_context>

<pallas_src>
import functools

import jax
import jax.numpy as jnp
from jax import lax
from jax.experimental import pallas as pl
from jax.experimental.pallas import tpu as pltpu


def _round_up(x, m):
    return ((x + m - 1) // m) * m


def _matmul_tt_kernel(a_ref, b_ref, o_ref, acc_ref, *, k_total, block_k, precision):
    """Computes one (tm, tn) output tile of C = A.T @ B.T.

    a_ref:   (tk, tm) f32 tile of A   (A stored as (K, M))
    b_ref:   (tn, tk) f32 tile of B   (B stored as (N, K))
    acc_ref: (tn, tm) f32 scratch accumulator (transposed output tile)
    """
    k_id = pl.program_id(2)
    nk = pl.num_programs(2)

    @pl.when(k_id == 0)
    def _():
        acc_ref[...] = jnp.zeros_like(acc_ref)

    a = a_ref[...]
    b = b_ref[...]

    # Ragged K handled in-kernel (no wrapper-side padding of A/B): zero the
    # out-of-bounds tail of the reduction dim.  Static branch -> only emitted
    # when K is actually ragged.
    if k_total % block_k != 0:
        rem = k_total % block_k
        limit = jnp.where(k_id == nk - 1, rem, block_k)
        a = jnp.where(lax.broadcasted_iota(jnp.int32, a.shape, 0) < limit, a, 0.0)
        b = jnp.where(lax.broadcasted_iota(jnp.int32, b.shape, 1) < limit, b, 0.0)

    # acc[n, m] += sum_k B[n, k] * A[k, m]
    # MXU-native dimension numbers: LHS (b) contracts its last dim, RHS (a)
    # contracts its first dim -> no per-step operand transposes.
    dims = (((1,), (0,)), ((), ()))

    if precision == "f32":
        update = lax.dot_general(b, a, dims, preferred_element_type=jnp.float32)
    elif precision == "bf16":
        update = lax.dot_general(
            b.astype(jnp.bfloat16), a.astype(jnp.bfloat16), dims,
            preferred_element_type=jnp.float32)
    else:  # "bf16x3": near-f32 accuracy on the bf16-native MXU.
        a_hi = a.astype(jnp.bfloat16)
        a_lo = (a - a_hi.astype(jnp.float32)).astype(jnp.bfloat16)
        b_hi = b.astype(jnp.bfloat16)
        b_lo = (b - b_hi.astype(jnp.float32)).astype(jnp.bfloat16)
        update = lax.dot_general(b_lo, a_hi, dims, preferred_element_type=jnp.float32)
        update += lax.dot_general(b_hi, a_lo, dims, preferred_element_type=jnp.float32)
        update += lax.dot_general(b_hi, a_hi, dims, preferred_element_type=jnp.float32)

    acc_ref[...] += update

    @pl.when(k_id == nk - 1)
    def _():
        # One XLU transpose per output tile (amortized over all k steps).
        o_ref[...] = acc_ref[...].T.astype(o_ref.dtype)


def matmul_transpose_transpose(A, B, *, tm=1024, tn=1024, tk=None,
                               precision="bf16x3"):
    """Returns A.T @ B.T for A: (K, M), B: (N, K)."""
    K, M = A.shape
    N, Kb = B.shape
    if K != Kb:
        raise ValueError("Matrices have incompatible dimensions")

    # Generation-aware VMEM capacity (v5e/v6e: 128 MiB, v7x: 64 MiB).
    try:
        vmem_phys = int(pltpu.get_tpu_info().vmem_capacity_bytes)
    except Exception:
        vmem_phys = 64 << 20  # conservative fallback

    # Deeper reduction tiles where VMEM is plentiful (v5e/v6e), tighter on v7x.
    if tk is None:
        tk = 1024 if vmem_phys >= (96 << 20) else 512

    # Clamp tile sizes for small problems; keep (8,128)/MXU alignment.
    tm = min(tm, _round_up(M, 128))
    tn = min(tn, _round_up(N, 128))
    tk = min(tk, _round_up(K, 128))

    # Guarantee >= 2 (i, j) output blocks so both v7x TensorCores get work.
    if pl.cdiv(M, tm) * pl.cdiv(N, tn) < 2:
        if tm >= 256 and tm % 256 == 0:
            tm //= 2
        elif tn >= 256 and tn % 256 == 0:
            tn //= 2

    grid = (pl.cdiv(M, tm), pl.cdiv(N, tn), pl.cdiv(K, tk))

    # Live VMEM footprint: double-buffered A/B input tiles, double-buffered
    # output tile, plus the resident accumulator scratch.  Generous headroom
    # for kernel-internal bf16 temporaries / compiler scratch, capped per
    # generation (leave room on v7x's 64 MiB physical VMEM).
    itemsize = 4
    needed = itemsize * (2 * tk * tm + 2 * tn * tk + 2 * tm * tn + tn * tm)
    cap = min(vmem_phys - (12 << 20), 100 << 20)
    vmem_limit = int(min(max(needed + (24 << 20), 48 << 20), cap))

    flops = 2 * M * N * K * (3 if precision == "bf16x3" else 1)
    cost = pl.CostEstimate(
        flops=flops,
        transcendentals=0,
        bytes_accessed=itemsize * (M * K + N * K + M * N),
    )

    kernel = functools.partial(
        _matmul_tt_kernel, k_total=K, block_k=tk, precision=precision)

    out = pl.pallas_call(
        kernel,
        out_shape=jax.ShapeDtypeStruct((M, N), A.dtype),
        grid_spec=pltpu.PrefetchScalarGridSpec(
            num_scalar_prefetch=0,
            grid=grid,
            in_specs=[
                # A tile: rows along K (reduction), cols along M (output rows)
                pl.BlockSpec((tk, tm), lambda i, j, k: (k, i)),
                # B tile: rows along N (output cols), cols along K (reduction)
                pl.BlockSpec((tn, tk), lambda i, j, k: (j, k)),
            ],
            out_specs=pl.BlockSpec((tm, tn), lambda i, j, k: (i, j)),
            scratch_shapes=[pltpu.VMEM((tn, tm), jnp.float32)],
        ),
        compiler_params=pltpu.CompilerParams(
            dimension_semantics=("parallel", "parallel", "arbitrary"),
            vmem_limit_bytes=vmem_limit,
        ),
        cost_estimate=cost,
    )(A, B)

    return out


class ModelNew:
    """JAX/Pallas equivalent of the PyTorch ModelNew (no learned parameters)."""

    def __init__(self, precision="bf16x3"):
        self.precision = precision

    def __call__(self, A, B):
        return matmul_transpose_transpose(A, B, precision=self.precision)


if __name__ == "__main__":
    key = jax.random.PRNGKey(0)
    k1, k2, k3, k4 = jax.random.split(key, 4)

    model = ModelNew()

    # Case 1: small aligned shapes.  A: (K, M), B: (N, K) -> output (M, N).
    K, M, N = 256, 256, 384
    A = jax.random.normal(k1, (K, M), dtype=jnp.float32)
    B = jax.random.normal(k2, (N, K), dtype=jnp.float32)
    C = jax.block_until_ready(model(A, B))
    C_ref = A.T @ B.T
    assert C.shape == (M, N), C.shape
    assert jnp.allclose(C, C_ref, atol=1e-3, rtol=1e-3), float(
        jnp.max(jnp.abs(C - C_ref))
    )

    # Case 2: ragged shapes exercising the in-kernel boundary/K-mask path.
    K2, M2, N2 = 100, 200, 150
    A2 = jax.random.normal(k3, (K2, M2), dtype=jnp.float32)
    B2 = jax.random.normal(k4, (N2, K2), dtype=jnp.float32)
    C2 = jax.block_until_ready(model(A2, B2))
    C2_ref = A2.T @ B2.T
    assert C2.shape == (M2, N2), C2.shape
    assert jnp.allclose(C2, C2_ref, atol=1e-3, rtol=1e-3), float(
        jnp.max(jnp.abs(C2 - C2_ref))
    )

    print("KERNEL_OK")
</pallas_src>

<mosaic_0001>
module attributes {stable_mosaic.version = 11 : i64} {
  func.func @_matmul_tt_kernel(%arg0: i32, %arg1: i32, %arg2: i32, %arg3: memref<256x128xf32, #tpu.memory_space<vmem>>, %arg4: memref<384x256xf32, #tpu.memory_space<vmem>>, %arg5: memref<128x384xf32, #tpu.memory_space<vmem>>, %arg6: memref<384x128xf32, #tpu.memory_space<vmem>>) attributes {dimension_semantics = [#tpu.dimension_semantics<parallel>, #tpu.dimension_semantics<parallel>, #tpu.dimension_semantics<arbitrary>], iteration_bounds = array<i64: 2, 1, 1>, scalar_prefetch = 0 : i64, scratch_operands = 1 : i64, tpu.core_type = #tpu.core_type<tc>, window_params = [{transform_indices = @transform_0, window_bounds = array<i64: 256, 128>}, {transform_indices = @transform_1, window_bounds = array<i64: 384, 256>}, {transform_indices = @transform_2, window_bounds = array<i64: 128, 384>}]} {
    %c0_i32 = arith.constant 0 : i32
    %0 = arith.cmpi eq, %arg2, %c0_i32 : i32
    %1 = arith.extui %0 : i1 to i32
    %c0_i32_0 = arith.constant 0 : i32
    %2 = arith.cmpi ne, %1, %c0_i32_0 : i32
    scf.if %2 {
      %cst_12 = arith.constant 0.000000e+00 : f32
      %24 = vector.broadcast %cst_12 : f32 to vector<384x128xf32>
      %c0_13 = arith.constant 0 : index
      %c0_14 = arith.constant 0 : index
      %25 = vector.load %arg6[%c0_13, %c0_14] : memref<384x128xf32, #tpu.memory_space<vmem>>, vector<384x128xf32>
      tpu.vector_store %arg6[%c0_13, %c0_14], %24 {strides = array<i32>} : memref<384x128xf32, #tpu.memory_space<vmem>>, vector<384x128xf32>,
    } else {
    }
    %c0 = arith.constant 0 : index
    %c0_1 = arith.constant 0 : index
    %3 = vector.load %arg3[%c0, %c0_1] : memref<256x128xf32, #tpu.memory_space<vmem>>, vector<256x128xf32>
    %c0_2 = arith.constant 0 : index
    %c0_3 = arith.constant 0 : index
    %4 = vector.load %arg4[%c0_2, %c0_3] : memref<384x256xf32, #tpu.memory_space<vmem>>, vector<384x256xf32>
    %5 = arith.truncf %3 : vector<256x128xf32> to vector<256x128xbf16>
    %6 = arith.extf %5 : vector<256x128xbf16> to vector<256x128xf32>
    %7 = arith.subf %3, %6 : vector<256x128xf32>
    %8 = arith.truncf %7 : vector<256x128xf32> to vector<256x128xbf16>
    %9 = arith.truncf %4 : vector<384x256xf32> to vector<384x256xbf16>
    %10 = arith.extf %9 : vector<384x256xbf16> to vector<384x256xf32>
    %11 = arith.subf %4, %10 : vector<384x256xf32>
    %12 = arith.truncf %11 : vector<384x256xf32> to vector<384x256xbf16>
    %cst = arith.constant dense<0.000000e+00> : vector<384x128xf32>
    %13 = tpu.matmul %12, %5, %cst {dimension_numbers = #tpu.dot_dimension_numbers<[1], [0], [0], [1], [0, 0, 1, 1], [], []>} : vector<384x256xbf16>, vector<256x128xbf16>, vector<384x128xf32> -> vector<384x128xf32>
    %cst_4 = arith.constant dense<0.000000e+00> : vector<384x128xf32>
    %14 = tpu.matmul %9, %8, %cst_4 {dimension_numbers = #tpu.dot_dimension_numbers<[1], [0], [0], [1], [0, 0, 1, 1], [], []>} : vector<384x256xbf16>, vector<256x128xbf16>, vector<384x128xf32> -> vector<384x128xf32>
    %15 = arith.addf %13, %14 : vector<384x128xf32>
    %cst_5 = arith.constant dense<0.000000e+00> : vector<384x128xf32>
    %16 = tpu.matmul %9, %5, %cst_5 {dimension_numbers = #tpu.dot_dimension_numbers<[1], [0], [0], [1], [0, 0, 1, 1], [], []>} : vector<384x256xbf16>, vector<256x128xbf16>, vector<384x128xf32> -> vector<384x128xf32>
    %17 = arith.addf %15, %16 : vector<384x128xf32>
    %c0_6 = arith.constant 0 : index
    %c0_7 = arith.constant 0 : index
    %18 = vector.load %arg6[%c0_6, %c0_7] : memref<384x128xf32, #tpu.memory_space<vmem>>, vector<384x128xf32>
    %19 = arith.addf %18, %17 : vector<384x128xf32>
    %c0_8 = arith.constant 0 : index
    %c0_9 = arith.constant 0 : index
    %20 = vector.load %arg6[%c0_8, %c0_9] : memref<384x128xf32, #tpu.memory_space<vmem>>, vector<384x128xf32>
    tpu.vector_store %arg6[%c0_8, %c0_9], %19 {strides = array<i32>} : memref<384x128xf32, #tpu.memory_space<vmem>>, vector<384x128xf32>,
    %c0_i32_10 = arith.constant 0 : i32
    %21 = arith.cmpi eq, %arg2, %c0_i32_10 : i32
    %22 = arith.extui %21 : i1 to i32
    %c0_i32_11 = arith.constant 0 : i32
    %23 = arith.cmpi ne, %22, %c0_i32_11 : i32
    scf.if %23 {
      %c0_12 = arith.constant 0 : index
      %c0_13 = arith.constant 0 : index
      %24 = vector.load %arg6[%c0_12, %c0_13] : memref<384x128xf32, #tpu.memory_space<vmem>>, vector<384x128xf32>
      %25 = tpu.transpose %24, [1, 0] : vector<384x128xf32> -> vector<128x384xf32>
      %c0_14 = arith.constant 0 : index
      %c0_15 = arith.constant 0 : index
      %26 = vector.load %arg5[%c0_14, %c0_15] : memref<128x384xf32, #tpu.memory_space<vmem>>, vector<128x384xf32>
      tpu.vector_store %arg5[%c0_14, %c0_15], %25 {strides = array<i32>} : memref<128x384xf32, #tpu.memory_space<vmem>>, vector<128x384xf32>,
    } else {
    }
    return
  }
  func.func @transform_0(%arg0: i32, %arg1: i32, %arg2: i32) -> (i32, i32) {
    %c0_i32 = arith.constant 0 : i32
    return %arg2, %arg0 : i32, i32
  }
  func.func @transform_1(%arg0: i32, %arg1: i32, %arg2: i32) -> (i32, i32) {
    %c0_i32 = arith.constant 0 : i32
    return %arg1, %arg2 : i32, i32
  }
  func.func @transform_2(%arg0: i32, %arg1: i32, %arg2: i32) -> (i32, i32) {
    %c0_i32 = arith.constant 0 : i32
    return %arg0, %arg1 : i32, i32
  }
}

</mosaic_0001>

<bundles_post_ra>
// kernel: tpu_custom_call.1
= control target key start
LH: loop header
LB: loop body
LE: loop exit
PB: predicated region body
PF: predicated region fallthrough
CT: control target
= control target key end

     0   :  { %7 = vsyncpa [#allocation4], 0  ;;  %s3530_s0 = inlined_call_operand.hbm [shape: f32[256,256], index: 0, kind: input, shape index: {}]   ;;  %s3531_s1 = inlined_call_operand.hbm [shape: f32[384,256], index: 1, kind: input, shape index: {}]   ;;  %s3532_s2 = inlined_call_operand.hbm [shape: f32[256,384], index: 2, kind: output, shape index: {}]  }
   0x1   :  { %9 = vsyncpa [#allocation4 + $0x1], 0 }
   0x2   :  { %10 = vsyncpa [#allocation7], 0 }
   0x3   :  { %11 = vsyncpa [#allocation5], 0 }
   0x4   :  { %13 = vsyncpa [#allocation5 + $0x1], 0  ;;  %s2264_s9 = smov 0   ;;  %s2266_s10 = smov 0  }
   0x5   :  { %s2268_s11 = smov 0   ;;  %s2270_s12 = smov 0  }
   0x6   :  { %s2272_s13 = smov 0   ;;  %s2274_s14 = smov 0  }
   0x7 LB: > { %3642 = sst [smem:[#allocation12_spill]] %s2237_s14  ;;  %s1968_s15 = sadd.s32 4294967295, %s2237_s14   ;;  %s2237_s14 = sphi %s2274_s14, %s3848_s14   ;;  %s2233_s13 = sphi %s2272_s13, %s3847_s13   ;;  %s2229_s12 = sphi %s2270_s12, %s3846_s12   ;;  %s2225_s11 = sphi %s2268_s11, %s3845_s11   ;;  %s2221_s10 = sphi %s2266_s10, %s3844_s10   ;;  %s2217_s9 = sphi %s2264_s9, %s3843_s9  }
   0x8   : > { %s1969_s16 = sadd.s32 4294967294, %s2237_s14   ;;  %p54_p0 = scmp.ne.s32.totalorder %s2225_s11, %s2221_s10 }
   0x9   : > { %p55_p1 = scmp.eq.s32.totalorder %s2237_s14, 0  ;;  %p60_p2 = scmp.ne.s32.totalorder %s2221_s10, %s2217_s9 }
   0xa   : > { %p2301_p3 = scmp.eq.s32.totalorder %s1968_s15, 0  ;;  %p114_p5 = scmp.eq.s32.totalorder %s1968_s15, 1 }
   0xb   : > { %p2305_p4 = por %p55_p1, %p54_p0  ;;  %p120_p7 = scmp.eq.s32.totalorder %s1969_s16, 1 }
   0xc   : > { %p2311_p6 = por %p2301_p3, %p60_p2  ;;  %p2315_p8 = por %p114_p5, %p54_p0 }
   0xd   : > { %p1970_p9 = scmp.ge.s32.totalorder %s2237_s14, 1  ;;  %p2320_p10 = por %p120_p7, %p60_p2 }
   0xe   : > { %s3645_s19 = scalar_select %p2311_p6, 1, 0 }
   0xf   : > { %s3646_s20 = scalar_select %p2315_p8, 1, 0 }
  0x10   : > { %s3647_s21 = scalar_select %p2320_p10, 1, 0 }
  0x11   : > { %p127_p11 = scmp.lt.s32.totalorder %s2237_s14, 3  ;;  %s2239_s23 = smov [#allocation6]  }
  0x12   : > { %s145_s24 = sshll.u32 %s2239_s23, 4  ;;  %p2038_p1 = scmp.lt.s32.totalorder %s2237_s14, 2  ;;  %s146_s24 = int_to_ptr.vmem [resolvable:$true] %s145_s24 }
  0x13   : > { %p2325_p12 = pnand %p1970_p9, %p127_p11  ;;  %s38_s27 = sadd.s32 1, %s2233_s13 }
  0x14   : > { %p2341_p2 = pnand %p2038_p1, %p2305_p4  ;;  %s2110_s28 = scalar_lea.vmem %s146_s24, 12288 }
  0x15   : > { %p2025_p13 = pneg %p2325_p12  ;;  %p2111_p9 = scmp.ne.s32.totalorder %s146_s24, %s2110_s28 }
  0x16   : > { %p2118_p0 = scmp.lt.s32.totalorder %s146_s24, %s146_s24  ;;  %p2119_p8 = scmp.lt.s32.totalorder %s2110_s28, %s2110_s28 }
  0x17   : > { %p2335_p5 = pnand %p2025_p13, %p2301_p3 }
  0x18   : > { %p2120_p6 = por %p2119_p8, %p2118_p0 }
  0x19   : > { %p2101_p7 = pneg %p2335_p5 }
  0x1b   : > { %p2113_p11 = pnand %p2111_p9, %p2101_p7 }
  0x1d   : > { %p2114_p10 = pneg %p2113_p11 }
  0x1f   : > { %p2121_p13 = pnand %p2120_p6, %p2114_p10 }
  0x21   : > { %2124 = shalt.err (!%p2121_p13)
}
  0x22   : > { %s2240_s29 = smov 256   ;;  %s2241_s30 = smov 16  }
  0x23   : > { %2028 = dma.hbm_to_vmem [thread:$0]  (!%p2335_p5), %s3531_s1, 12288, %s146_s24, [#allocation7], %s2240_s29, %s2240_s29, %s2241_s30  }
  0x24   : > { %p40_p4 = scmp.ge.s32.totalorder %s38_s27, 2  ;;  %s47_s5 = sadd.s32 1, %s2225_s11 }
  0x25   : > { %s159_s6 = sand.u32 1, %s2225_s11   ;;  %s1974_s15 = sshll.u32 %s2233_s13, 7 }
  0x26   : > { %s3850_s27 = smov (%p40_p4, %s38_s27), 0  ;;  %s1973_s7 = sshll.u32 %s159_s6, 8 }
  0x27   : > { %s43_s8 = ssub.s32 %s2233_s13, %s3850_s27  ;;  %s171_s23 = scalar_lea.hbm %s3530_s0, %s1974_s15 }
  0x28   : > { %p45_p6 = scmp.eq.s32.totalorder %s43_s8, 0  ;;  %s163_s25 = scalar_lea.vmem [#allocation3], %s1973_s7 }
  0x29   : > { %s172_s28 = sshll.u32 %s163_s25, 4  ;;  %s160_s24 = scalar_lea.sflag [#allocation4], %s159_s6  ;;  %s173_s28 = int_to_ptr.vmem [resolvable:$true] %s172_s28 }
  0x2a   : > { %s2366_s14 = scalar_select %p45_p6, %s2225_s11, %s47_s5  }
  0x2b   : > { %p2127_p8 = pneg %p2341_p2  ;;  %s2138_s30 = scalar_lea.vmem %s173_s28, 4096 }
  0x2c   : > { %p2139_p10 = scmp.ne.s32.totalorder %s173_s28, %s2138_s30  ;;  %s2242_s3 = smov [#allocation3]  }
  0x2d   : > { %s2143_s4 = sshll.u32 %s2242_s3, 4  ;;  %s2144_s4 = int_to_ptr.vmem [resolvable:$false] %s2143_s4 }
  0x2e   : > { %p2141_p0 = pnand %p2139_p10, %p2127_p8  ;;  %s2145_s8 = scalar_lea.vmem %s2144_s4, 8192 }
  0x2f   : > { %p2146_p5 = scmp.lt.s32.totalorder %s173_s28, %s2144_s4  ;;  %p2147_p7 = scmp.lt.s32.totalorder %s2145_s8, %s2138_s30 }
  0x30   : > { %p2142_p1 = pneg %p2141_p0 }
  0x31   : > { %p2148_p9 = por %p2147_p7, %p2146_p5 }
  0x33   : > { %p2149_p11 = pnand %p2148_p9, %p2142_p1 }
  0x35   : > { %2152 = shalt.err (!%p2149_p11)
}
  0x36   : > { %s2243_s7 = smov 128   ;;  %s2244_s5 = smov 8  }
  0x37   : > { %2032 = dma.hbm_to_vmem [thread:$0]  (!%p2341_p2), %s171_s23, 4096, %s173_s28, %s160_s24, %s2240_s29, %s2243_s7, %s2244_s5  }
  0x38   : > { %184 = sbr.rel (%p2325_p12) target bundleno = 759 (0x2f7), region = 28 }
  0x3d   : > { %s2376_s6 = sand.u32 1, %s2221_s10   ;;  %p3651_p13 = scmp.ne.s32.totalorder %s3645_s19, 0 }
  0x3e   : > { %s1976_s15 = sshll.u32 %s2376_s6, 8  ;;  %s187_s16 = scalar_lea.sflag [#allocation4], %s2376_s6 }
  0x3f   : > { %s2380_s18 = scalar_lea.vmem [#allocation3], %s1976_s15 }
  0x40   : > { %2204 = dma.done.wait (%p3651_p13), %s187_s16, 4096  }
  0x41   : > { %2206 = vsyncadd (%p3651_p13), %s187_s16, 4294963200 }
  0x42   : > { %2208 = dma.done.wait (%p2301_p3), [#allocation7], 12288  }
  0x43   : > { %2210 = vsyncadd (%p2301_p3), [#allocation7], 4294955008  ;;  %v3537_v0 = vmov 0   ;;  %v287_v1 = vld [vmem:[%s2380_s18 + $0x70] sm:$0xff]  ;;  %v288_v2 = vld [vmem:[%s2380_s18 + $0x78] sm:$0xff]  ;;  %s2015_s17 = smul.u32 384, %s2376_s6 }
  0x44   : > { %785 = vmatprep.subr.bf16.mxu0 %v3537_v0  ;;  %1983 = vmatprep.subr.bf16.mxu1 %v3537_v0  ;;  %v285_v3 = vld [vmem:[%s2380_s18 + $0x60] sm:$0xff]  ;;  %v2395_v4 = vpack.c.bf16 %v288_v2, %v287_v1  ;;  %v286_v5 = vld [vmem:[%s2380_s18 + $0x68] sm:$0xff]  ;;  %v283_v6 = vld [vmem:[%s2380_s18 + $0x50] sm:$0xff]  ;;  %s2016_s22 = smul.u32 6144, %s2229_s12  ;;  %s1848_s28 = scalar_lea.sflag [#allocation5], %s2376_s6 }
  0x45   : > { %v284_v7 = vld [vmem:[%s2380_s18 + $0x58] sm:$0xff]  ;;  %v2400_v8 = vpack.c.bf16 %v286_v5, %v285_v3  ;;  %v281_v10 = vld [vmem:[%s2380_s18 + $0x40] sm:$0xff]  ;;  %v282_v11 = vld [vmem:[%s2380_s18 + $0x48] sm:$0xff]  ;;  %s3410_s19 = scalar_lea.vmem [#allocation8], %s2015_s17  ;;  %p3839_p12 = scmp.ne.s32.totalorder %s3646_s20, 0 }
  0x46   : > { %v2402_v9 = vpack.c.bf16 %v284_v7, %v283_v6  ;;  %v431_v12 = vunpack.c.l.bf16 %v2395_v4  ;;  %v432_v13 = vunpack.c.h.bf16 %v2395_v4  ;;  %v2411_v17 = vpack.c.bf16 %v282_v11, %v281_v10  ;;  %v279_v23 = vld [vmem:[%s2380_s18 + $0x30] sm:$0xff]  ;;  %v280_v24 = vld [vmem:[%s2380_s18 + $0x38] sm:$0xff]  ;;  %v277_v32 = vld [vmem:[%s2380_s18 + $0x20] sm:$0xff]  ;;  %s1864_s26 = sshll.u32 %s3410_s19, 4  ;;  %s3479_s25 = scalar_lea.hbm %s3532_s2, %s2016_s22  ;;  %s3481_s26 = int_to_ptr.vmem [resolvable:$true] %s1864_s26 }
  0x47   : > { %v429_v14 = vunpack.c.l.bf16 %v2400_v8  ;;  %v430_v15 = vunpack.c.h.bf16 %v2400_v8  ;;  %v2418_v31 = vpack.c.bf16 %v280_v24, %v279_v23  ;;  %v278_v33 = vld [vmem:[%s2380_s18 + $0x28] sm:$0xff]  ;;  %v275_v40 = vld [vmem:[%s2380_s18 + $0x10] sm:$0xff]  ;;  %v276_v41 = vld [vmem:[%s2380_s18 + $0x18] sm:$0xff]  ;;  %s2153_s24 = scalar_lea.vmem %s3481_s26, 6144  ;;  %s2246_s12 = smov [#allocation8]  }
  0x48   : > { %v427_v16 = vunpack.c.l.bf16 %v2402_v9  ;;  %v463_v18 = vsub.f32 %v287_v1, %v431_v12  ;;  %v464_v19 = vsub.f32 %v288_v2, %v432_v13  ;;  %v428_v20 = vunpack.c.h.bf16 %v2402_v9  ;;  %v273_v44 = vld [vmem:[%s2380_s18] sm:$0xff]  ;;  %v274_v45 = vld [vmem:[%s2380_s18 + $0x8] sm:$0xff]  ;;  %v2446_v54 = vld [vmem:[#allocation6 + $0x18] sm:$0xff]  ;;  %p2154_p3 = scmp.ne.s32.totalorder %s3481_s26, %s2153_s24  ;;  %s2157_s30 = sshll.u32 %s2246_s12, 4  ;;  %s2158_s30 = int_to_ptr.vmem [resolvable:$false] %s2157_s30 }
  0x49   : > { %v461_v21 = vsub.f32 %v285_v3, %v429_v14  ;;  %v462_v22 = vsub.f32 %v286_v5, %v430_v15  ;;  %v425_v27 = vunpack.c.l.bf16 %v2411_v17  ;;  %v426_v28 = vunpack.c.h.bf16 %v2411_v17  ;;  %v2444_v53 = vld [vmem:[#allocation6 + $0x8] sm:$0xff]  ;;  %v303_v58 = vld [vmem:[%s2380_s18 + $0xf0] sm:$0xff]  ;;  %v356_v60 = vld [vmem:[#allocation6 + $0x198] sm:$0xff]  ;;  %s2159_s3 = scalar_lea.vmem %s2158_s30, 12288  ;;  %p2160_p6 = scmp.lt.s32.totalorder %s3481_s26, %s2158_s30 }
  0x4a   : > { %v488_v25 = vpack.c.bf16 %v464_v19, %v463_v18  ;;  %v459_v26 = vsub.f32 %v283_v6, %v427_v16  ;;  %v460_v30 = vsub.f32 %v284_v7, %v428_v20  ;;  %v423_v37 = vunpack.c.l.bf16 %v2418_v31  ;;  %v354_v59 = vld [vmem:[#allocation6 + $0x188] sm:$0xff]  ;;  %v304_v61 = vld [vmem:[%s2380_s18 + $0xf8] sm:$0xff]  ;;  %v305_v62 = vld [vmem:[#allocation6] sm:$0xff]  ;;  %p2155_p2 = pnand %p2154_p3, %p3839_p12  ;;  %p2161_p8 = scmp.lt.s32.totalorder %s2159_s3, %s2153_s24 }
  0x4b   : > { %v487_v29 = vpack.c.bf16 %v462_v22, %v461_v21  ;;  %v457_v34 = vsub.f32 %v281_v10, %v425_v27  ;;  %v458_v35 = vsub.f32 %v282_v11, %v426_v28  ;;  %v424_v38 = vunpack.c.h.bf16 %v2418_v31  ;;  %v307_v63 = vld [vmem:[#allocation6 + $0x10] sm:$0xff]  ;;  %v301_v12 = vld [vmem:[%s2380_s18 + $0xe0] sm:$0xff]  ;;  %v302_v13 = vld [vmem:[%s2380_s18 + $0xe8] sm:$0xff] }
  0x4c   : > { %786 = vmatpush1.bf16.msra.mxu0 %v488_v25  ;;  %1999 = vmatpush1.bf16.msra.mxu1 %v488_v25  ;;  %v486_v36 = vpack.c.bf16 %v460_v30, %v459_v26  ;;  %v2426_v39 = vpack.c.bf16 %v278_v33, %v277_v32  ;;  %v2432_v43 = vpack.c.bf16 %v276_v41, %v275_v40  ;;  %v300_v25 = vld [vmem:[%s2380_s18 + $0xd8] sm:$0xff]  ;;  %v297_v28 = vld [vmem:[%s2380_s18 + $0xc0] sm:$0xff]  ;;  %p2156_p4 = pneg %p2155_p2  ;;  %p2162_p10 = por %p2161_p8, %p2160_p6 }
  0x4d   : > { %787 = vmatprep.subr.bf16.mxu0 %v3537_v0  ;;  %1984 = vmatprep.subr.bf16.mxu1 %v3537_v0  ;;  %v485_v42 = vpack.c.bf16 %v458_v35, %v457_v34  ;;  %v455_v46 = vsub.f32 %v279_v23, %v423_v37  ;;  %v456_v47 = vsub.f32 %v280_v24, %v424_v38  ;;  %v299_v24 = vld [vmem:[%s2380_s18 + $0xd0] sm:$0xff] }
  0x4e   : > { %v421_v48 = vunpack.c.l.bf16 %v2426_v39  ;;  %v422_v49 = vunpack.c.h.bf16 %v2426_v39  ;;  %v2440_v50 = vpack.c.bf16 %v274_v45, %v273_v44  ;;  %v419_v51 = vunpack.c.l.bf16 %v2432_v43  ;;  %p2163_p0 = pnand %p2162_p10, %p2156_p4 }
  0x4f   : > { %v420_v52 = vunpack.c.h.bf16 %v2432_v43  ;;  %v484_v55 = vpack.c.bf16 %v456_v47, %v455_v46  ;;  %v2455_v2 = vpack.c.bf16 %v2446_v54, %v2444_v53  ;;  %v2458_v7 = vpack.c.bf16 %v356_v60, %v354_v59  ;;  %v312_v46 = vld [vmem:[#allocation6 + $0x38] sm:$0xff]  ;;  %v2507_v59 = vld [vmem:[%s2380_s18 + $0xa0] sm:$0xff]  ;;  %v2510_v60 = vld [vmem:[%s2380_s18 + $0xa8] sm:$0xff] }
  0x50   : > { %788 = vmatpush1.bf16.msra.mxu0 %v487_v29  ;;  %2000 = vmatpush1.bf16.msra.mxu1 %v487_v29  ;;  %v453_v56 = vsub.f32 %v277_v32, %v421_v48  ;;  %v454_v57 = vsub.f32 %v278_v33, %v422_v49  ;;  %v417_v1 = vunpack.c.l.bf16 %v2440_v50  ;;  %v451_v3 = vsub.f32 %v275_v40, %v419_v51  ;;  %v298_v29 = vld [vmem:[%s2380_s18 + $0xc8] sm:$0xff]  ;;  %v296_v49 = vld [vmem:[%s2380_s18 + $0xb8] sm:$0xff]  ;;  %v309_v51 = vld [vmem:[#allocation6 + $0x20] sm:$0xff] }
  0x51   : > { %789 = vmatprep.subr.bf16.mxu0 %v3537_v0  ;;  %1985 = vmatprep.subr.bf16.mxu1 %v3537_v0  ;;  %v452_v5 = vsub.f32 %v276_v41, %v420_v52  ;;  %v418_v6 = vunpack.c.h.bf16 %v2440_v50  ;;  %3652 = vst [vmem:[#allocation13_spill] sm:$0xff] %v2458_v7  ;;  %v2460_v11 = vpack.c.bf16 %v304_v61, %v303_v58  ;;  %v311_v52 = vld [vmem:[#allocation6 + $0x30] sm:$0xff] }
  0x52   : > { %v483_v10 = vpack.c.bf16 %v454_v57, %v453_v56  ;;  %v2464_v14 = vpack.c.bf16 %v307_v63, %v305_v62  ;;  %817 = vmatprep.mubr.bf16.mxu0 %v2455_v2  ;;  %913 = vmatprep.mubr.bf16.mxu1 %v2458_v7  ;;  %v449_v19 = vsub.f32 %v273_v44, %v417_v1  ;;  %v295_v44 = vld [vmem:[%s2380_s18 + $0xb0] sm:$0xff]  ;;  %v548_v56 = vunpack.c.h.bf16 %v2455_v2  ;;  %v325_v7 = vld [vmem:[#allocation6 + $0xa0] sm:$0xff] }
  0x53   : > { %v482_v18 = vpack.c.bf16 %v452_v5, %v451_v3  ;;  %v450_v20 = vsub.f32 %v274_v45, %v418_v6  ;;  %v2472_v21 = vpack.c.bf16 %v302_v13, %v301_v12  ;;  %v447_v22 = vunpack.c.l.bf16 %v2460_v11  ;;  %v310_v45 = vld [vmem:[#allocation6 + $0x28] sm:$0xff] }
  0x54   : > { %790 = vmatpush1.bf16.msra.mxu0 %v486_v36  ;;  %2001 = vmatpush1.bf16.msra.mxu1 %v486_v36  ;;  %v545_v15 = vunpack.c.l.bf16 %v2464_v14  ;;  %v547_v16 = vunpack.c.h.bf16 %v2464_v14  ;;  %v448_v23 = vunpack.c.h.bf16 %v2460_v11  ;;  %v2489_v33 = vpack.c.bf16 %v300_v25, %v299_v24 }
  0x55   : > { %791 = vmatprep.subr.bf16.mxu0 %v3537_v0  ;;  %1986 = vmatprep.subr.bf16.mxu1 %v3537_v0  ;;  %v445_v32 = vunpack.c.l.bf16 %v2472_v21  ;;  %v481_v34 = vpack.c.bf16 %v450_v20, %v449_v19  ;;  %v479_v35 = vsub.f32 %v303_v58, %v447_v22  ;;  %v446_v37 = vunpack.c.h.bf16 %v2472_v21  ;;  %v314_v19 = vld [vmem:[#allocation6 + $0x48] sm:$0xff]  ;;  %v316_v20 = vld [vmem:[#allocation6 + $0x58] sm:$0xff] }
  0x56   : > { %v2478_v26 = vsub.f32 %v305_v62, %v545_v15  ;;  %v2480_v27 = vsub.f32 %v307_v63, %v547_v16  ;;  %v480_v36 = vsub.f32 %v304_v61, %v448_v23  ;;  %v2494_v38 = vpack.c.bf16 %v298_v29, %v297_v28 }
  0x57   : > { %v477_v40 = vsub.f32 %v301_v12, %v445_v32  ;;  %v443_v41 = vunpack.c.l.bf16 %v2489_v33  ;;  %v478_v48 = vsub.f32 %v302_v13, %v446_v37  ;;  %v2512_v61 = vpack.c.bf16 %v312_v46, %v310_v45  ;;  %v291_v37 = vld [vmem:[%s2380_s18 + $0x90] sm:$0xff] }
  0x58   : > { %792 = vmatpush1.bf16.msra.mxu0 %v485_v42  ;;  %2002 = vmatpush1.bf16.msra.mxu1 %v485_v42  ;;  %v444_v42 = vunpack.c.h.bf16 %v2489_v33  ;;  %v496_v47 = vpack.c.bf16 %v480_v36, %v479_v35  ;;  %v441_v57 = vunpack.c.l.bf16 %v2494_v38  ;;  %v442_v58 = vunpack.c.h.bf16 %v2494_v38 }
  0x59   : > { %793 = vmatprep.subr.bf16.mxu0 %v3537_v0  ;;  %1987 = vmatprep.subr.bf16.mxu1 %v3537_v0  ;;  %v475_v62 = vsub.f32 %v299_v24, %v443_v41  ;;  %v2514_v1 = vpack.c.bf16 %v296_v49, %v295_v44  ;;  %v2516_v3 = vpack.c.bf16 %v311_v52, %v309_v51  ;;  %v550_v12 = vunpack.c.l.bf16 %v2512_v61 }
  0x5a   : > { %v476_v63 = vsub.f32 %v300_v25, %v444_v42  ;;  %v495_v5 = vpack.c.bf16 %v478_v48, %v477_v40  ;;  %v473_v13 = vsub.f32 %v297_v28, %v441_v57  ;;  %v2529_v15 = vpack.c.bf16 %v2510_v60, %v2507_v59  ;;  %v313_v25 = vld [vmem:[#allocation6 + $0x40] sm:$0xff]  ;;  %v315_v28 = vld [vmem:[#allocation6 + $0x50] sm:$0xff]  ;;  %v292_v40 = vld [vmem:[%s2380_s18 + $0x98] sm:$0xff] }
  0x5b   : > { %v552_v16 = vunpack.c.h.bf16 %v2512_v61  ;;  %v2535_v22 = vsub.f32 %v310_v45, %v550_v12  ;;  %v551_v23 = vunpack.c.h.bf16 %v2516_v3  ;;  %v439_v24 = vunpack.c.l.bf16 %v2514_v1  ;;  %v319_v48 = vld [vmem:[#allocation6 + $0x70] sm:$0xff]  ;;  %v324_v42 = vld [vmem:[#allocation6 + $0x98] sm:$0xff] }
  0x5c   : > { %794 = vmatpush1.bf16.msra.mxu0 %v484_v55  ;;  %2003 = vmatpush1.bf16.msra.mxu1 %v484_v55  ;;  %v546_v55 = vunpack.c.l.bf16 %v2455_v2  ;;  %v440_v35 = vunpack.c.h.bf16 %v2514_v1  ;;  %v2550_v41 = vpack.c.bf16 %v316_v20, %v314_v19 }
  0x5d   : > { %795 = vmatprep.subr.bf16.mxu0 %v3537_v0  ;;  %1988 = vmatprep.subr.bf16.mxu1 %v3537_v0  ;;  %v2539_v32 = vsub.f32 %v312_v46, %v552_v16  ;;  %v2544_v36 = vsub.f32 %v311_v52, %v551_v23  ;;  %v437_v46 = vunpack.c.l.bf16 %v2529_v15  ;;  %v438_v52 = vunpack.c.h.bf16 %v2529_v15 }
  0x5e   : > { %v2519_v6 = vsub.f32 %v2444_v53, %v546_v55  ;;  %v474_v53 = vsub.f32 %v298_v29, %v442_v58  ;;  %v494_v29 = vpack.c.bf16 %v476_v63, %v475_v62  ;;  %v289_v55 = vld [vmem:[%s2380_s18 + $0x80] sm:$0xff]  ;;  %v554_v57 = vunpack.c.l.bf16 %v2550_v41 }
  0x5f   : > { %v556_v58 = vunpack.c.h.bf16 %v2550_v41  ;;  %v472_v62 = vsub.f32 %v296_v49, %v440_v35  ;;  %v2564_v63 = vpack.c.bf16 %v292_v40, %v291_v37  ;;  %v317_v35 = vld [vmem:[#allocation6 + $0x60] sm:$0xff] }
  0x60   : > { %796 = vmatpush1.bf16.msra.mxu0 %v483_v10  ;;  %2004 = vmatpush1.bf16.msra.mxu1 %v483_v10  ;;  %v2522_v10 = vsub.f32 %v2446_v54, %v548_v56  ;;  %v493_v45 = vpack.c.bf16 %v474_v53, %v473_v13  ;;  %v290_v56 = vld [vmem:[%s2380_s18 + $0x88] sm:$0xff]  ;;  %v320_v53 = vld [vmem:[#allocation6 + $0x78] sm:$0xff] }
  0x61   : > { %797 = vmatprep.subr.bf16.mxu0 %v3537_v0  ;;  %1989 = vmatprep.subr.bf16.mxu1 %v3537_v0  ;;  %v2572_v13 = vsub.f32 %v316_v20, %v556_v58  ;;  %v2574_v16 = vpack.c.bf16 %v290_v56, %v289_v55  ;;  %v436_v58 = vunpack.c.h.bf16 %v2564_v63 }
  0x64   : > { %798 = vmatpush1.bf16.msra.mxu0 %v482_v18  ;;  %2005 = vmatpush1.bf16.msra.mxu1 %v482_v18  ;;  %v549_v18 = vunpack.c.l.bf16 %v2516_v3 }
  0x65   : > { %799 = vmatprep.subr.bf16.mxu0 %v3537_v0  ;;  %1990 = vmatprep.subr.bf16.mxu1 %v3537_v0 }
  0x68   : > { %800 = vmatpush1.bf16.msra.mxu0 %v481_v34  ;;  %2006 = vmatpush1.bf16.msra.mxu1 %v481_v34  ;;  %v2541_v34 = vsub.f32 %v309_v51, %v549_v18  ;;  %v471_v51 = vsub.f32 %v295_v44, %v439_v24  ;;  %v2570_v44 = vsub.f32 %v314_v19, %v554_v57  ;;  %v318_v18 = vld [vmem:[#allocation6 + $0x68] sm:$0xff]  ;;  %v435_v57 = vunpack.c.l.bf16 %v2564_v63 }
  0x69   : > { %801 = vmatprep.subr.bf16.mxu0 %v3537_v0  ;;  %1991 = vmatprep.subr.bf16.mxu1 %v3537_v0  ;;  %v469_v24 = vsub.f32 %v2507_v59, %v437_v46  ;;  %v2590_v59 = vpack.c.bf16 %v320_v53, %v318_v18 }
  0x6a   : > { %v492_v20 = vpack.c.bf16 %v472_v62, %v471_v51  ;;  %v467_v62 = vsub.f32 %v291_v37, %v435_v57  ;;  %v2644_v57 = vld [vmem:[#allocation6 + $0x1b8] sm:$0xff] }
  0x6b   : > { %v558_v51 = vunpack.c.l.bf16 %v2590_v59  ;;  %3663 = vst [vmem:[#allocation23_spill] sm:$0xff] %v2644_v57 }
  0x6c   : > { %802 = vmatpush2.bf16.msra.mxu0 %v496_v47  ;;  %2007 = vmatpush2.bf16.msra.mxu1 %v496_v47  ;;  %v2555_v47 = vpack.c.bf16 %v315_v28, %v313_v25 }
  0x6d   : > { %803 = vmatprep.subr.bf16.mxu0 %v3537_v0  ;;  %1992 = vmatprep.subr.bf16.mxu1 %v3537_v0  ;;  %v2602_v19 = vsub.f32 %v318_v18, %v558_v51 }
  0x6e   : > { %v555_v12 = vunpack.c.h.bf16 %v2555_v47 }
  0x70   : > { %804 = vmatpush2.bf16.msra.mxu0 %v495_v5  ;;  %2008 = vmatpush2.bf16.msra.mxu1 %v495_v5  ;;  %v553_v5 = vunpack.c.l.bf16 %v2555_v47  ;;  %v2578_v49 = vsub.f32 %v315_v28, %v555_v12  ;;  %v2593_v28 = vpack.c.bf16 %v319_v48, %v317_v35 }
  0x71   : > { %805 = vmatprep.subr.bf16.mxu0 %v3537_v0  ;;  %1993 = vmatprep.subr.bf16.mxu1 %v3537_v0 }
  0x72   : > { %v2576_v23 = vsub.f32 %v313_v25, %v553_v5  ;;  %v468_v5 = vsub.f32 %v292_v40, %v436_v58  ;;  %v557_v12 = vunpack.c.l.bf16 %v2593_v28  ;;  %v559_v25 = vunpack.c.h.bf16 %v2593_v28  ;;  %v321_v40 = vld [vmem:[#allocation6 + $0x80] sm:$0xff] }
  0x74   : > { %806 = vmatpush2.bf16.msra.mxu0 %v494_v29  ;;  %2009 = vmatpush2.bf16.msra.mxu1 %v494_v29  ;;  %v470_v29 = vsub.f32 %v2510_v60, %v438_v52  ;;  %v433_v60 = vunpack.c.l.bf16 %v2574_v16  ;;  %v560_v52 = vunpack.c.h.bf16 %v2590_v59  ;;  %v2606_v30 = vsub.f32 %v317_v35, %v557_v12  ;;  %v326_v12 = vld [vmem:[#allocation6 + $0xa8] sm:$0xff] }
  0x75   : > { %807 = vmatprep.subr.bf16.mxu0 %v3537_v0  ;;  %1994 = vmatprep.subr.bf16.mxu1 %v3537_v0  ;;  %v2608_v54 = vsub.f32 %v319_v48, %v559_v25  ;;  %v490_v58 = vpack.c.bf16 %v468_v5, %v467_v62  ;;  %v2634_v5 = vld [vmem:[#allocation6 + $0x1a8] sm:$0xff] }
  0x76   : > { %v491_v46 = vpack.c.bf16 %v470_v29, %v469_v24  ;;  %v2604_v24 = vsub.f32 %v320_v53, %v560_v52  ;;  %v322_v29 = vld [vmem:[#allocation6 + $0x88] sm:$0xff]  ;;  %3653 = vst [vmem:[#allocation14_spill] sm:$0xff] %v2606_v30  ;;  %v465_v37 = vsub.f32 %v289_v55, %v433_v60  ;;  %v3654_v53 = vmov 0   ;;  %3659 = vst [vmem:[#allocation19_spill] sm:$0xff] %v2634_v5  ;;  %v327_v30 = vld [vmem:[#allocation6 + $0xb0] sm:$0xff] }
  0x77   : > { %v2616_v35 = vpack.c.bf16 %v324_v42, %v322_v29 }
  0x78   : > { %808 = vmatpush2.bf16.msra.mxu0 %v493_v45  ;;  %2010 = vmatpush2.bf16.msra.mxu1 %v493_v45  ;;  %v434_v45 = vunpack.c.h.bf16 %v2574_v16 }
  0x79   : > { %809 = vmatprep.subr.bf16.mxu0 %v3537_v0  ;;  %1995 = vmatprep.subr.bf16.mxu1 %v3537_v0  ;;  %v562_v55 = vunpack.c.l.bf16 %v2616_v35  ;;  %v564_v25 = vunpack.c.h.bf16 %v2616_v35 }
  0x7b   : > { %v2630_v52 = vsub.f32 %v322_v29, %v562_v55  ;;  %v2632_v62 = vsub.f32 %v324_v42, %v564_v25  ;;  %v2658_v55 = vpack.c.bf16 %v327_v30, %v325_v7 }
  0x7c   : > { %810 = vmatpush2.bf16.msra.mxu0 %v492_v20  ;;  %2011 = vmatpush2.bf16.msra.mxu1 %v492_v20  ;;  %v323_v20 = vld [vmem:[#allocation6 + $0x90] sm:$0xff] }
  0x7d   : > { %811 = vmatprep.subr.bf16.mxu0 %v3537_v0  ;;  %1996 = vmatprep.subr.bf16.mxu1 %v3537_v0  ;;  %v466_v0 = vsub.f32 %v290_v56, %v434_v45  ;;  %v2618_v48 = vpack.c.bf16 %v323_v20, %v321_v40  ;;  %v2624_v56 = vld [vmem:[#allocation6 + $0x190] sm:$0xff]  ;;  %3657 = vst [vmem:[#allocation17_spill] sm:$0xff] %v2630_v52  ;;  %3658 = vst [vmem:[#allocation18_spill] sm:$0xff] %v2632_v62  ;;  %v565_v29 = vunpack.c.l.bf16 %v2658_v55 }
  0x7e   : > { %3656 = vst [vmem:[#allocation16_spill] sm:$0xff] %v2624_v56  ;;  %v567_v42 = vunpack.c.h.bf16 %v2658_v55  ;;  %v335_v62 = vld [vmem:[#allocation6 + $0xf0] sm:$0xff] }
  0x7f   : > { %v489_v60 = vpack.c.bf16 %v466_v0, %v465_v37  ;;  %v561_v45 = vunpack.c.l.bf16 %v2618_v48  ;;  %v563_v51 = vunpack.c.h.bf16 %v2618_v48  ;;  %v328_v0 = vld [vmem:[#allocation6 + $0xb8] sm:$0xff] }
  0x80   : > { %812 = vmatpush2.bf16.msra.mxu0 %v491_v46  ;;  %2012 = vmatpush2.bf16.msra.mxu1 %v491_v46  ;;  %v2622_v46 = vld [vmem:[#allocation6 + $0x180] sm:$0xff] }
  0x81   : > { %813 = vmatprep.subr.bf16.mxu0 %v3654_v53  ;;  %1997 = vmatprep.subr.bf16.mxu1 %v3654_v53  ;;  %3655 = vst [vmem:[#allocation15_spill] sm:$0xff] %v2622_v46  ;;  %v2636_v37 = vsub.f32 %v321_v40, %v561_v45  ;;  %v2642_v18 = vpack.c.bf16 %v2624_v56, %v2622_v46  ;;  %v2666_v45 = vld [vmem:[#allocation6 + $0x1a0] sm:$0xff]  ;;  %v330_v46 = vld [vmem:[#allocation6 + $0xc8] sm:$0xff] }
  0x82   : > { %v2652_v40 = vpack.c.bf16 %v328_v0, %v326_v12  ;;  %3665 = vst [vmem:[#allocation25_spill] sm:$0xff] %v2666_v45 }
  0x83   : > { %3660 = vst [vmem:[#allocation20_spill] sm:$0xff] %v2636_v37  ;;  %3662 = vst [vmem:[#allocation22_spill] sm:$0xff] %v2642_v18  ;;  %v2684_v37 = vsub.f32 %v325_v7, %v565_v29 }
  0x84   : > { %814 = vmatpush2.bf16.msra.mxu0 %v490_v58  ;;  %2013 = vmatpush2.bf16.msra.mxu1 %v490_v58  ;;  %v2638_v58 = vsub.f32 %v323_v20, %v563_v51  ;;  %v2656_v20 = vpack.c.bf16 %v2644_v57, %v2634_v5  ;;  %v566_v25 = vunpack.c.l.bf16 %v2652_v40  ;;  %v2668_v51 = vld [vmem:[#allocation6 + $0x1b0] sm:$0xff]  ;;  %v2674_v57 = vld [vmem:[#allocation6 + $0x1c8] sm:$0xff] }
  0x85   : > { %815 = vmatprep.subr.bf16.mxu0 %v3654_v53  ;;  %1998 = vmatprep.subr.bf16.mxu1 %v3654_v53  ;;  %3666 = vst [vmem:[#allocation26_spill] sm:$0xff] %v2668_v51  ;;  %3667 = vst [vmem:[#allocation27_spill] sm:$0xff] %v2674_v57  ;;  %v2690_v52 = vpack.c.bf16 %v2668_v51, %v2666_v45  ;;  %v2722_v51 = vld [vmem:[#allocation6 + $0x1e8] sm:$0xff]  ;;  %v2724_v45 = vld [vmem:[#allocation6 + $0x1f8] sm:$0xff] }
  0x86   : > { %3661 = vst [vmem:[#allocation21_spill] sm:$0xff] %v2638_v58  ;;  %3664 = vst [vmem:[#allocation24_spill] sm:$0xff] %v2656_v20  ;;  %v2676_v5 = vsub.f32 %v326_v12, %v566_v25  ;;  %v2686_v58 = vsub.f32 %v327_v30, %v567_v42  ;;  %v329_v12 = vld [vmem:[#allocation6 + $0xc0] sm:$0xff]  ;;  %v331_v25 = vld [vmem:[#allocation6 + $0xd0] sm:$0xff] }
  0x87   : > { %3671 = vst [vmem:[#allocation31_spill] sm:$0xff] %v2684_v37  ;;  %3673 = vst [vmem:[#allocation33_spill] sm:$0xff] %v2690_v52  ;;  %v2706_v42 = vpack.c.bf16 %v331_v25, %v329_v12  ;;  %v334_v37 = vld [vmem:[#allocation6 + $0xe8] sm:$0xff] }
  0x88   : > { %816 = vmatpush2.bf16.msra.mxu0 %v489_v60  ;;  %2014 = vmatpush2.bf16.msra.mxu1 %v489_v60  ;;  %v568_v60 = vunpack.c.h.bf16 %v2652_v40  ;;  %3668 = vst [vmem:[#allocation28_spill] sm:$0xff] %v2676_v5  ;;  %3672 = vst [vmem:[#allocation32_spill] sm:$0xff] %v2686_v58  ;;  %v336_v58 = vld [vmem:[#allocation6 + $0xf8] sm:$0xff] }
  0x89   : > { %1010 = vmatprep.subr.bf16.mxu1 %v3654_v53  ;;  %1235 = vmatprep.subr.bf16.mxu0 %v3654_v53  ;;  %3677 = vst [vmem:[#allocation37_spill] sm:$0xff] %v2722_v51  ;;  %3678 = vst [vmem:[#allocation38_spill] sm:$0xff] %v2724_v45 }
  0x8a   : > { %v2678_v56 = vsub.f32 %v328_v0, %v568_v60  ;;  %v2714_v60 = vld [vmem:[#allocation6 + $0x1c0] sm:$0xff]  ;;  %v2716_v0 = vld [vmem:[#allocation6 + $0x1d0] sm:$0xff] }
  0x8b   : > { %818 = vmatmul.mubr.bf16.vlgmr.msra.gmra.mxu0 %v2464_v14  ;;  %914 = vmatmul.mubr.bf16.vlgmr.msra.gmra.mxu1 %v2642_v18  ;;  %v332_v18 = vld [vmem:[#allocation6 + $0xd8] sm:$0xff]  ;;  %3675 = vst [vmem:[#allocation35_spill] sm:$0xff] %v2714_v60  ;;  %3676 = vst [vmem:[#allocation36_spill] sm:$0xff] %v2716_v0 }
  0x8c   : > { %1011 = vmatpush1.bf16.msra.mxu1 %v2395_v4  ;;  %1236 = vmatpush1.bf16.msra.mxu0 %v2395_v4  ;;  %3669 = vst [vmem:[#allocation29_spill] sm:$0xff] %v2678_v56  ;;  %v2682_v4 = vld [vmem:[#allocation6 + $0x1d8] sm:$0xff]  ;;  %v2704_v30 = vpack.c.bf16 %v332_v18, %v330_v46 }
  0x8d   : > { %1012 = vmatprep.subr.bf16.mxu1 %v3654_v53  ;;  %825 = vmatprep.mubr.bf16.mxu0 %v2512_v61  ;;  %3670 = vst [vmem:[#allocation30_spill] sm:$0xff] %v2682_v4  ;;  %v2702_v7 = vpack.c.bf16 %v2682_v4, %v2674_v57  ;;  %v569_v4 = vunpack.c.l.bf16 %v2706_v42  ;;  %v571_v57 = vunpack.c.h.bf16 %v2706_v42 }
  0x8e   : > { %921 = vmatprep.mubr.bf16.mxu1 %v2656_v20  ;;  %1237 = vmatprep.subr.bf16.mxu0 %v3654_v53  ;;  %v572_v29 = vunpack.c.h.bf16 %v2704_v30 }
  0x8f   : > { %3674 = vst [vmem:[#allocation34_spill] sm:$0xff] %v2702_v7  ;;  %v2732_v5 = vsub.f32 %v329_v12, %v569_v4  ;;  %v2734_v56 = vsub.f32 %v331_v25, %v571_v57  ;;  %v2751_v57 = vpack.c.bf16 %v336_v58, %v334_v37 }
  0x90   : > { %1013 = vmatpush1.bf16.msra.mxu1 %v2400_v8  ;;  %1238 = vmatpush1.bf16.msra.mxu0 %v2400_v8  ;;  %v570_v8 = vunpack.c.l.bf16 %v2704_v30  ;;  %v2728_v20 = vsub.f32 %v332_v18, %v572_v29  ;;  %v2764_v29 = vld [vmem:[#allocation6 + $0x1f0] sm:$0xff] }
  0x91   : > { %1014 = vmatprep.subr.bf16.mxu1 %v3654_v53  ;;  %1239 = vmatprep.subr.bf16.mxu0 %v3654_v53  ;;  %3681 = vst [vmem:[#allocation41_spill] sm:$0xff] %v2732_v5  ;;  %3682 = vst [vmem:[#allocation42_spill] sm:$0xff] %v2734_v56  ;;  %v574_v25 = vunpack.c.l.bf16 %v2751_v57 }
  0x92   : > { %3680 = vst [vmem:[#allocation40_spill] sm:$0xff] %v2728_v20  ;;  %3686 = vst [vmem:[#allocation46_spill] sm:$0xff] %v2764_v29  ;;  %v339_v20 = vld [vmem:[#allocation6 + $0x110] sm:$0xff] }
  0x93   : > { %826 = vmatmul.mubr.bf16.gmra.mxu0 %v2516_v3  ;;  %922 = vmatmul.mubr.bf16.gmra.mxu1 %v2690_v52  ;;  %v2726_v52 = vsub.f32 %v330_v46, %v570_v8  ;;  %v2745_v46 = vpack.c.bf16 %v2724_v45, %v2722_v51  ;;  %v576_v8 = vunpack.c.h.bf16 %v2751_v57  ;;  %v2770_v45 = vld [vmem:[#allocation6 + $0x208] sm:$0xff]  ;;  %v2772_v51 = vld [vmem:[#allocation6 + $0x218] sm:$0xff] }
  0x94   : > { %1015 = vmatpush1.bf16.msra.mxu1 %v2402_v9  ;;  %833 = vmatprep.mubr.bf16.mxu0 %v2550_v41  ;;  %3687 = vst [vmem:[#allocation47_spill] sm:$0xff] %v2770_v45  ;;  %3688 = vst [vmem:[#allocation48_spill] sm:$0xff] %v2772_v51 }
  0x95   : > { %929 = vmatprep.mubr.bf16.mxu1 %v2702_v7  ;;  %1240 = vmatpush1.bf16.msra.mxu0 %v2402_v9  ;;  %3679 = vst [vmem:[#allocation39_spill] sm:$0xff] %v2726_v52  ;;  %v2738_v9 = vpack.c.bf16 %v2716_v0, %v2714_v60  ;;  %v333_v7 = vld [vmem:[#allocation6 + $0xe0] sm:$0xff]  ;;  %3684 = vst [vmem:[#allocation44_spill] sm:$0xff] %v2745_v46  ;;  %v2774_v0 = vsub.f32 %v334_v37, %v574_v25 }
  0x96   : > { %1016 = vmatprep.subr.bf16.mxu1 %v3654_v53  ;;  %1241 = vmatprep.subr.bf16.mxu0 %v3654_v53  ;;  %v2754_v12 = vpack.c.bf16 %v335_v62, %v333_v7  ;;  %v2776_v60 = vsub.f32 %v336_v58, %v576_v8  ;;  %v337_v52 = vld [vmem:[#allocation6 + $0x100] sm:$0xff]  ;;  %v2792_v58 = vpack.c.bf16 %v2772_v51, %v2770_v45  ;;  %v2812_v8 = vld [vmem:[#allocation6 + $0x210] sm:$0xff]  ;;  %v2817_v51 = vld [vmem:[#allocation6 + $0x228] sm:$0xff] }
  0x97   : > { %3683 = vst [vmem:[#allocation43_spill] sm:$0xff] %v2738_v9  ;;  %3694 = vst [vmem:[#allocation54_spill] sm:$0xff] %v2812_v8  ;;  %v2819_v45 = vld [vmem:[#allocation6 + $0x238] sm:$0xff] }
  0x98   : > { %1017 = vmatpush1.bf16.msra.mxu1 %v2411_v17  ;;  %v573_v4 = vunpack.c.l.bf16 %v2754_v12  ;;  %v575_v18 = vunpack.c.h.bf16 %v2754_v12  ;;  %3692 = vst [vmem:[#allocation52_spill] sm:$0xff] %v2792_v58  ;;  %3695 = vst [vmem:[#allocation55_spill] sm:$0xff] %v2817_v51 }
  0x99   : > { %1242 = vmatpush1.bf16.msra.mxu0 %v2411_v17  ;;  %1018 = vmatprep.subr.bf16.mxu1 %v3654_v53  ;;  %v2762_v17 = vld [vmem:[#allocation6 + $0x1e0] sm:$0xff]  ;;  %3696 = vst [vmem:[#allocation56_spill] sm:$0xff] %v2819_v45 }
  0x9a   : > { %1243 = vmatprep.subr.bf16.mxu0 %v3654_v53  ;;  %3685 = vst [vmem:[#allocation45_spill] sm:$0xff] %v2762_v17  ;;  %v2780_v5 = vsub.f32 %v333_v7, %v573_v4  ;;  %v2782_v56 = vsub.f32 %v335_v62, %v575_v18  ;;  %v2802_v7 = vpack.c.bf16 %v339_v20, %v337_v52 }
  0x9b   : > { %834 = vmatmul.mubr.bf16.gmra.mxu0 %v2555_v47  ;;  %930 = vmatmul.mubr.bf16.gmra.mxu1 %v2738_v9  ;;  %v340_v9 = vld [vmem:[#allocation6 + $0x118] sm:$0xff] }
  0x9c   : > { %841 = vmatprep.mubr.bf16.mxu0 %v2590_v59  ;;  %937 = vmatprep.mubr.bf16.mxu1 %v2745_v46  ;;  %v338_v46 = vld [vmem:[#allocation6 + $0x108] sm:$0xff]  ;;  %3689 = vst [vmem:[#allocation49_spill] sm:$0xff] %v2780_v5  ;;  %3690 = vst [vmem:[#allocation50_spill] sm:$0xff] %v2782_v56  ;;  %v577_v25 = vunpack.c.l.bf16 %v2802_v7  ;;  %v579_v37 = vunpack.c.h.bf16 %v2802_v7 }
  0x9d   : > { %1019 = vmatpush1.bf16.msra.mxu1 %v2418_v31  ;;  %1244 = vmatpush1.bf16.msra.mxu0 %v2418_v31  ;;  %v2786_v31 = vpack.c.bf16 %v2764_v29, %v2762_v17  ;;  %v2798_v62 = vpack.c.bf16 %v340_v9, %v338_v46 }
  0x9e   : > { %1020 = vmatprep.subr.bf16.mxu1 %v3654_v53  ;;  %1245 = vmatprep.subr.bf16.mxu0 %v3654_v53 }
  0x9f   : > { %3691 = vst [vmem:[#allocation51_spill] sm:$0xff] %v2786_v31  ;;  %v578_v18 = vunpack.c.l.bf16 %v2798_v62  ;;  %v580_v4 = vunpack.c.h.bf16 %v2798_v62 }
  0xa1   : > { %1021 = vmatpush1.bf16.msra.mxu1 %v2426_v39  ;;  %1246 = vmatpush1.bf16.msra.mxu0 %v2426_v39  ;;  %v2810_v39 = vld [vmem:[#allocation6 + $0x200] sm:$0xff]  ;;  %v2822_v29 = vsub.f32 %v338_v46, %v578_v18  ;;  %v2824_v17 = vsub.f32 %v340_v9, %v580_v4  ;;  %v2856_v46 = vld [vmem:[#allocation6 + $0x248] sm:$0xff]  ;;  %v2882_v18 = vld [vmem:[#allocation6 + $0x250] sm:$0xff] }
  0xa2   : > { %1022 = vmatprep.subr.bf16.mxu1 %v3654_v53  ;;  %1247 = vmatprep.subr.bf16.mxu0 %v3654_v53  ;;  %3693 = vst [vmem:[#allocation53_spill] sm:$0xff] %v2810_v39  ;;  %v2834_v5 = vpack.c.bf16 %v2812_v8, %v2810_v39  ;;  %3699 = vst [vmem:[#allocation59_spill] sm:$0xff] %v2856_v46  ;;  %v2884_v4 = vld [vmem:[#allocation6 + $0x268] sm:$0xff]  ;;  %v2886_v9 = vld [vmem:[#allocation6 + $0x278] sm:$0xff] }
  0xa3   : > { %842 = vmatmul.mubr.bf16.gmra.mxu0 %v2593_v28  ;;  %938 = vmatmul.mubr.bf16.gmra.mxu1 %v2786_v31  ;;  %v2830_v31 = vsub.f32 %v339_v20, %v579_v37  ;;  %v2854_v20 = vld [vmem:[#allocation6 + $0x230] sm:$0xff]  ;;  %v2858_v37 = vld [vmem:[#allocation6 + $0x258] sm:$0xff]  ;;  %3704 = vst [vmem:[#allocation64_spill] sm:$0xff] %v2882_v18  ;;  %3705 = vst [vmem:[#allocation65_spill] sm:$0xff] %v2884_v4  ;;  %v2898_v56 = vpack.c.bf16 %v2886_v9, %v2884_v4 }
  0xa4   : > { %849 = vmatprep.mubr.bf16.mxu0 %v2616_v35  ;;  %945 = vmatprep.mubr.bf16.mxu1 %v2792_v58  ;;  %v2828_v58 = vsub.f32 %v337_v52, %v577_v25  ;;  %v2852_v52 = vld [vmem:[#allocation6 + $0x220] sm:$0xff]  ;;  %3698 = vst [vmem:[#allocation58_spill] sm:$0xff] %v2854_v20  ;;  %3700 = vst [vmem:[#allocation60_spill] sm:$0xff] %v2858_v37  ;;  %v2870_v25 = vpack.c.bf16 %v2858_v37, %v2856_v46  ;;  %v2912_v4 = vld [vmem:[#allocation6 + $0x288] sm:$0xff] }
  0xa5   : > { %1023 = vmatpush1.bf16.msra.mxu1 %v2432_v43  ;;  %1248 = vmatpush1.bf16.msra.mxu0 %v2432_v43  ;;  %v2840_v43 = vpack.c.bf16 %v2819_v45, %v2817_v51  ;;  %3697 = vst [vmem:[#allocation57_spill] sm:$0xff] %v2852_v52  ;;  %3706 = vst [vmem:[#allocation66_spill] sm:$0xff] %v2886_v9  ;;  %v2910_v9 = vld [vmem:[#allocation6 + $0x270] sm:$0xff]  ;;  %v3040_v8 = vld [vmem:[#allocation6 + $0x160] sm:$0xff] }
  0xa6   : > { %1024 = vmatprep.subr.bf16.mxu1 %v3654_v53  ;;  %1249 = vmatprep.subr.bf16.mxu0 %v3654_v53  ;;  %3702 = vst [vmem:[#allocation62_spill] sm:$0xff] %v2870_v25  ;;  %3708 = vst [vmem:[#allocation68_spill] sm:$0xff] %v2898_v56  ;;  %v3048_v39 = vld [vmem:[#allocation6 + $0x2f0] sm:$0xff] }
  0xa7   : > { %3710 = vst [vmem:[#allocation70_spill] sm:$0xff] %v2910_v9  ;;  %3711 = vst [vmem:[#allocation71_spill] sm:$0xff] %v2912_v4 }
  0xa8   : > { %3734 = vst [vmem:[#allocation94_spill] sm:$0xff] %v3048_v39 }
  0xa9   : > { %1025 = vmatpush1.bf16.msra.mxu1 %v2440_v50  ;;  %1250 = vmatpush1.bf16.msra.mxu0 %v2440_v50  ;;  %v2866_v50 = vpack.c.bf16 %v2854_v20, %v2852_v52  ;;  %v3004_v20 = vld [vmem:[#allocation6 + $0x140] sm:$0xff]  ;;  %v3006_v52 = vld [vmem:[#allocation6 + $0x150] sm:$0xff] }
  0xaa   : > { %1026 = vmatprep.subr.bf16.mxu1 %v3654_v53  ;;  %1251 = vmatprep.subr.bf16.mxu0 %v3654_v53 }
  0xab   : > { %850 = vmatmul.mubr.bf16.gmra.mxu0 %v2618_v48  ;;  %946 = vmatmul.mubr.bf16.gmra.mxu1 %v2834_v5  ;;  %3701 = vst [vmem:[#allocation61_spill] sm:$0xff] %v2866_v50 }
  0xac   : > { %857 = vmatprep.mubr.bf16.mxu0 %v2652_v40  ;;  %953 = vmatprep.mubr.bf16.mxu1 %v2840_v43 }
  0xad   : > { %1027 = vmatpush2.bf16.msra.mxu1 %v2460_v11  ;;  %1252 = vmatpush2.bf16.msra.mxu0 %v2460_v11  ;;  %v2880_v11 = vld [vmem:[#allocation6 + $0x240] sm:$0xff] }
  0xae   : > { %1028 = vmatprep.subr.bf16.mxu1 %v3654_v53  ;;  %1253 = vmatprep.subr.bf16.mxu0 %v3654_v53  ;;  %3703 = vst [vmem:[#allocation63_spill] sm:$0xff] %v2880_v11 }
  0xb1   : > { %1029 = vmatpush2.bf16.msra.mxu1 %v2472_v21  ;;  %1254 = vmatpush2.bf16.msra.mxu0 %v2472_v21  ;;  %v2894_v21 = vpack.c.bf16 %v2882_v18, %v2880_v11  ;;  %v2914_v18 = vld [vmem:[#allocation6 + $0x298] sm:$0xff] }
  0xb2   : > { %1030 = vmatprep.subr.bf16.mxu1 %v3654_v53  ;;  %1255 = vmatprep.subr.bf16.mxu0 %v3654_v53  ;;  %3712 = vst [vmem:[#allocation72_spill] sm:$0xff] %v2914_v18  ;;  %v2926_v11 = vpack.c.bf16 %v2914_v18, %v2912_v4  ;;  %v2938_v18 = vld [vmem:[#allocation6 + $0x290] sm:$0xff]  ;;  %v2940_v4 = vld [vmem:[#allocation6 + $0x128] sm:$0xff] }
  0xb3   : > { %858 = vmatmul.mubr.bf16.gmra.mxu0 %v2658_v55  ;;  %954 = vmatmul.mubr.bf16.gmra.mxu1 %v2866_v50  ;;  %3707 = vst [vmem:[#allocation67_spill] sm:$0xff] %v2894_v21  ;;  %3716 = vst [vmem:[#allocation76_spill] sm:$0xff] %v2938_v18  ;;  %v3020_v50 = vld [vmem:[#allocation6 + $0x2f8] sm:$0xff] }
  0xb4   : > { %865 = vmatprep.mubr.bf16.mxu0 %v2704_v30  ;;  %961 = vmatprep.mubr.bf16.mxu1 %v2870_v25  ;;  %3714 = vst [vmem:[#allocation74_spill] sm:$0xff] %v2926_v11  ;;  %v3014_v25 = vld [vmem:[#allocation6 + $0x168] sm:$0xff]  ;;  %3730 = vst [vmem:[#allocation90_spill] sm:$0xff] %v3020_v50 }
  0xb5   : > { %1031 = vmatpush2.bf16.msra.mxu1 %v2489_v33  ;;  %1256 = vmatpush2.bf16.msra.mxu0 %v2489_v33  ;;  %v2908_v33 = vld [vmem:[#allocation6 + $0x260] sm:$0xff] }
  0xb6   : > { %1032 = vmatprep.subr.bf16.mxu1 %v3654_v53  ;;  %1257 = vmatprep.subr.bf16.mxu0 %v3654_v53  ;;  %3709 = vst [vmem:[#allocation69_spill] sm:$0xff] %v2908_v33 }
  0xb9   : > { %1033 = vmatpush2.bf16.msra.mxu1 %v2494_v38  ;;  %1258 = vmatpush2.bf16.msra.mxu0 %v2494_v38  ;;  %v2922_v38 = vpack.c.bf16 %v2910_v9, %v2908_v33  ;;  %v2942_v9 = vld [vmem:[#allocation6 + $0x138] sm:$0xff] }
  0xba   : > { %1034 = vmatprep.subr.bf16.mxu1 %v3654_v53  ;;  %1259 = vmatprep.subr.bf16.mxu0 %v3654_v53  ;;  %v2946_v33 = vld [vmem:[#allocation6 + $0x2b8] sm:$0xff] }
  0xbb   : > { %866 = vmatmul.mubr.bf16.gmra.mxu0 %v2706_v42  ;;  %962 = vmatmul.mubr.bf16.gmra.mxu1 %v2894_v21  ;;  %3713 = vst [vmem:[#allocation73_spill] sm:$0xff] %v2922_v38  ;;  %3718 = vst [vmem:[#allocation78_spill] sm:$0xff] %v2946_v33  ;;  %v2984_v21 = vld [vmem:[#allocation6 + $0x2d8] sm:$0xff] }
  0xbc   : > { %873 = vmatprep.mubr.bf16.mxu0 %v2751_v57  ;;  %969 = vmatprep.mubr.bf16.mxu1 %v2898_v56  ;;  %3724 = vst [vmem:[#allocation84_spill] sm:$0xff] %v2984_v21 }
  0xbd   : > { %1035 = vmatpush2.bf16.msra.mxu1 %v2514_v1  ;;  %1260 = vmatpush2.bf16.msra.mxu0 %v2514_v1  ;;  %v2936_v1 = vld [vmem:[#allocation6 + $0x280] sm:$0xff] }
  0xbe   : > { %1036 = vmatprep.subr.bf16.mxu1 %v3654_v53  ;;  %1261 = vmatprep.subr.bf16.mxu0 %v3654_v53  ;;  %3715 = vst [vmem:[#allocation75_spill] sm:$0xff] %v2936_v1 }
  0xc1   : > { %1037 = vmatpush2.bf16.msra.mxu1 %v2529_v15  ;;  %1262 = vmatpush2.bf16.msra.mxu0 %v2529_v15  ;;  %v2944_v15 = vld [vmem:[#allocation6 + $0x2a8] sm:$0xff] }
  0xc2   : > { %1038 = vmatprep.subr.bf16.mxu1 %v3654_v53  ;;  %1263 = vmatprep.subr.bf16.mxu0 %v3654_v53  ;;  %3717 = vst [vmem:[#allocation77_spill] sm:$0xff] %v2944_v15  ;;  %v2962_v56 = vpack.c.bf16 %v2946_v33, %v2944_v15  ;;  %v2976_v33 = vld [vmem:[#allocation6 + $0x2b0] sm:$0xff]  ;;  %v2978_v15 = vld [vmem:[#allocation6 + $0x148] sm:$0xff] }
  0xc3   : > { %874 = vmatmul.mubr.bf16.gmra.mxu0 %v2754_v12  ;;  %970 = vmatmul.mubr.bf16.gmra.mxu1 %v2922_v38  ;;  %v2958_v38 = vpack.c.bf16 %v2942_v9, %v2940_v4  ;;  %3722 = vst [vmem:[#allocation82_spill] sm:$0xff] %v2976_v33 }
  0xc4   : > { %881 = vmatprep.mubr.bf16.mxu0 %v2798_v62  ;;  %977 = vmatprep.mubr.bf16.mxu1 %v2926_v11  ;;  %v2954_v11 = vpack.c.bf16 %v2938_v18, %v2936_v1  ;;  %3720 = vst [vmem:[#allocation80_spill] sm:$0xff] %v2962_v56  ;;  %v2974_v18 = vld [vmem:[#allocation6 + $0x2a0] sm:$0xff]  ;;  %v2980_v1 = vld [vmem:[#allocation6 + $0x158] sm:$0xff] }
  0xc5   : > { %1039 = vmatpush2.bf16.msra.mxu1 %v2564_v63  ;;  %1264 = vmatpush2.bf16.msra.mxu0 %v2564_v63  ;;  %v2968_v63 = vld [vmem:[#allocation6 + $0x120] sm:$0xff]  ;;  %3721 = vst [vmem:[#allocation81_spill] sm:$0xff] %v2974_v18  ;;  %v2992_v37 = vpack.c.bf16 %v2976_v33, %v2974_v18  ;;  %v3012_v18 = vld [vmem:[#allocation6 + $0x2d0] sm:$0xff] }
  0xc6   : > { %1040 = vmatprep.subr.bf16.mxu1 %v3654_v53  ;;  %1265 = vmatprep.subr.bf16.mxu0 %v3654_v53  ;;  %3719 = vst [vmem:[#allocation79_spill] sm:$0xff] %v2954_v11  ;;  %v2970_v53 = vld [vmem:[#allocation6 + $0x130] sm:$0xff]  ;;  %v3010_v33 = vld [vmem:[#allocation6 + $0x2c0] sm:$0xff]  ;;  %3728 = vst [vmem:[#allocation88_spill] sm:$0xff] %v3012_v18 }
  0xc7   : > { %3725 = vst [vmem:[#allocation85_spill] sm:$0xff] %v2992_v37  ;;  %3727 = vst [vmem:[#allocation87_spill] sm:$0xff] %v3010_v33  ;;  %v3028_v45 = vpack.c.bf16 %v3012_v18, %v3010_v33  ;;  %v3044_v18 = vld [vmem:[#allocation6 + $0x170] sm:$0xff]  ;;  %v3046_v33 = vld [vmem:[#allocation6 + $0x2e0] sm:$0xff] }
  0xc8   : > { %3733 = vst [vmem:[#allocation93_spill] sm:$0xff] %v3046_v33 }
  0xc9   : > { %1041 = vmatpush2.bf16.msra.mxu1 %v2574_v16  ;;  %1266 = vmatpush2.bf16.msra.mxu0 %v2574_v16  ;;  %v2982_v16 = vld [vmem:[#allocation6 + $0x2c8] sm:$0xff]  ;;  %3731 = vst [vmem:[#allocation91_spill] sm:$0xff] %v3028_v45 }
  0xca   : > { %3723 = vst [vmem:[#allocation83_spill] sm:$0xff] %v2982_v16  ;;  %v3000_v46 = vpack.c.bf16 %v2984_v21, %v2982_v16  ;;  %v3016_v21 = vld [vmem:[#allocation6 + $0x178] sm:$0xff]  ;;  %v3018_v16 = vld [vmem:[#allocation6 + $0x2e8] sm:$0xff] }
  0xcb   : > { %882 = vmatmul.mubr.bf16.gmra.mxu0 %v2802_v7  ;;  %978 = vmatmul.mubr.bf16.gmra.mxu1 %v2954_v11  ;;  %v2988_v11 = vpack.c.bf16 %v2970_v53, %v2968_v63  ;;  %3729 = vst [vmem:[#allocation89_spill] sm:$0xff] %v3018_v16  ;;  %v3036_v51 = vpack.c.bf16 %v3020_v50, %v3018_v16 }
  0xcc   : > { %889 = vmatprep.mubr.bf16.mxu0 %v2958_v38  ;;  %985 = vmatprep.mubr.bf16.mxu1 %v2962_v56  ;;  %v2996_v56 = vpack.c.bf16 %v2980_v1, %v2978_v15  ;;  %3726 = vst [vmem:[#allocation86_spill] sm:$0xff] %v3000_v46  ;;  %v3052_v50 = vpack.c.bf16 %v3044_v18, %v3040_v8 }
  0xcd   : > { %3732 = vst [vmem:[#allocation92_spill] sm:$0xff] %v3036_v51  ;;  %v3056_v16 = vpack.c.bf16 %v3048_v39, %v3046_v33  ;;  %v3737_v39 = vpack.c.bf16 %v2539_v32, %v2535_v22  ;;  %v3738_v33 = vpack.c.bf16 %v2544_v36, %v2541_v34  ;;  %v3747_v22 = vld [vmem:[#allocation21_spill] sm:$0xff]  ;;  %v3748_v32 = vld [vmem:[#allocation20_spill] sm:$0xff] }
  0xce   : > { %v3749_v34 = vpack.c.bf16 %v3747_v22, %v3748_v32  ;;  %v3750_v36 = vld [vmem:[#allocation29_spill] sm:$0xff] }
  0xd3   : > { %890 = vmatmul.mubr.bf16.gmra.mxu0 %v2988_v11  ;;  %986 = vmatmul.mubr.bf16.gmra.mxu1 %v2992_v37  ;;  %v3024_v37 = vpack.c.bf16 %v3006_v52, %v3004_v20 }
  0xd4   : > { %897 = vmatprep.mubr.bf16.mxu0 %v2996_v56  ;;  %993 = vmatprep.mubr.bf16.mxu1 %v3000_v46  ;;  %v3032_v46 = vpack.c.bf16 %v3016_v21, %v3014_v25 }
  0xdb   : > { %898 = vmatmul.mubr.bf16.gmra.mxu0 %v3024_v37  ;;  %994 = vmatmul.mubr.bf16.gmra.mxu1 %v3028_v45  ;;  %v3736_v45 = vpack.c.bf16 %v2480_v27, %v2478_v26  ;;  %v3741_v26 = vpack.c.bf16 %v2604_v24, %v2602_v19  ;;  %v3742_v27 = vld [vmem:[#allocation14_spill] sm:$0xff] }
  0xdc   : > { %905 = vmatprep.mubr.bf16.mxu0 %v3032_v46  ;;  %1001 = vmatprep.mubr.bf16.mxu1 %v3036_v51  ;;  %v3735_v51 = vpack.c.bf16 %v2522_v10, %v2519_v6  ;;  %v3745_v6 = vld [vmem:[#allocation17_spill] sm:$0xff] }
  0xe3   : > { %906 = vmatmul.mubr.bf16.gmra.mxu0 %v3052_v50  ;;  %1002 = vmatmul.mubr.bf16.gmra.mxu1 %v3056_v16 }
  0xe4   : > { %1042 = vmatprep.mubr.bf16.mxu1 %v3735_v51  ;;  %1267 = vmatprep.mubr.bf16.mxu0 %v2455_v2  ;;  %v3739_v2 = vpack.c.bf16 %v2572_v13, %v2570_v44  ;;  %v3754_v44 = vld [vmem:[#allocation31_spill] sm:$0xff] }
  0xeb   : > { %1043 = vmatmul.mubr.bf16.vlgmr.msra.gmra.mxu1 %v3736_v45  ;;  %1268 = vmatmul.mubr.bf16.vlgmr.msra.gmra.mxu0 %v2464_v14  ;;  %v3740_v14 = vpack.c.bf16 %v2578_v49, %v2576_v23  ;;  %v3756_v23 = vld [vmem:[#allocation40_spill] sm:$0xff]  ;;  %v3757_v49 = vld [vmem:[#allocation39_spill] sm:$0xff]  ;;  %v3764_v45 = vld [vmem:[#allocation49_spill] sm:$0xff] }
  0xec   : > { %1050 = vmatprep.mubr.bf16.mxu1 %v3737_v39  ;;  %1275 = vmatprep.mubr.bf16.mxu0 %v2512_v61  ;;  %v3743_v61 = vpack.c.bf16 %v2608_v54, %v3742_v27  ;;  %v3753_v54 = vld [vmem:[#allocation32_spill] sm:$0xff]  ;;  %v3758_v19 = vpack.c.bf16 %v3756_v23, %v3757_v49  ;;  %v589_v27 = vunpack.c.l.bf16 %v3052_v50  ;;  %v3773_v23 = vld [vmem:[#allocation19_spill] sm:$0xff] }
  0xed   : > { %v3755_v13 = vpack.c.bf16 %v3753_v54, %v3754_v44  ;;  %v3770_v54 = vld [vmem:[#allocation24_spill] sm:$0xff] }
  0xee   : > { %v598_v44 = vunpack.c.l.bf16 %v3770_v54 }
  0xf0   : > { %v694_v49 = vsub.f32 %v3773_v23, %v598_v44  ;;  %v3788_v44 = vld [vmem:[#allocation52_spill] sm:$0xff] }
  0xf3   : > { %1051 = vmatmul.mubr.bf16.gmra.mxu1 %v3738_v33  ;;  %1276 = vmatmul.mubr.bf16.gmra.mxu0 %v2516_v3  ;;  %v3744_v3 = vld [vmem:[#allocation18_spill] sm:$0xff]  ;;  %v586_v33 = vunpack.c.l.bf16 %v2996_v56 }
  0xf4   : > { %1058 = vmatprep.mubr.bf16.mxu1 %v3739_v2  ;;  %1283 = vmatprep.mubr.bf16.mxu0 %v2550_v41  ;;  %v3746_v10 = vpack.c.bf16 %v3744_v3, %v3745_v6  ;;  %v3751_v41 = vld [vmem:[#allocation28_spill] sm:$0xff]  ;;  %v588_v2 = vunpack.c.h.bf16 %v2996_v56  ;;  %v3768_v6 = vld [vmem:[#allocation13_spill] sm:$0xff] }
  0xfb   : > { %1059 = vmatmul.mubr.bf16.gmra.mxu1 %v3740_v14  ;;  %1284 = vmatmul.mubr.bf16.gmra.mxu0 %v2555_v47  ;;  %v3752_v47 = vpack.c.bf16 %v3750_v36, %v3751_v41  ;;  %v585_v14 = vunpack.c.l.bf16 %v3024_v37 }
  0xfc   : > { %1066 = vmatprep.mubr.bf16.mxu1 %v3741_v26  ;;  %1291 = vmatprep.mubr.bf16.mxu0 %v2590_v59  ;;  %v3759_v59 = vld [vmem:[#allocation42_spill] sm:$0xff]  ;;  %v587_v26 = vunpack.c.h.bf16 %v3024_v37 }
 0x103   : > { %1067 = vmatmul.mubr.bf16.gmra.mxu1 %v3743_v61  ;;  %1292 = vmatmul.mubr.bf16.gmra.mxu0 %v2593_v28  ;;  %v3760_v28 = vld [vmem:[#allocation41_spill] sm:$0xff]  ;;  %v591_v61 = vunpack.c.h.bf16 %v3052_v50 }
 0x104   : > { %1074 = vmatprep.mubr.bf16.mxu1 %v3746_v10  ;;  %1299 = vmatprep.mubr.bf16.mxu0 %v2616_v35  ;;  %v3761_v24 = vpack.c.bf16 %v3759_v59, %v3760_v28  ;;  %v3762_v35 = vpack.c.bf16 %v2776_v60, %v2774_v0  ;;  %v594_v10 = vunpack.c.l.bf16 %v3768_v6 }
 0x10b   : > { %1075 = vmatmul.mubr.bf16.gmra.mxu1 %v3749_v34  ;;  %1300 = vmatmul.mubr.bf16.gmra.mxu0 %v2618_v48  ;;  %v582_v48 = vunpack.c.l.bf16 %v2958_v38  ;;  %v3769_v34 = vld [vmem:[#allocation22_spill] sm:$0xff] }
 0x10c   : > { %1082 = vmatprep.mubr.bf16.mxu1 %v3752_v47  ;;  %1307 = vmatprep.mubr.bf16.mxu0 %v2652_v40  ;;  %v584_v40 = vunpack.c.h.bf16 %v2958_v38  ;;  %v593_v36 = vunpack.c.l.bf16 %v3769_v34  ;;  %v595_v41 = vunpack.c.h.bf16 %v3769_v34 }
 0x10d   : > { %v678_v0 = vsub.f32 %v2940_v4, %v582_v48 }
 0x10e   : > { %v680_v60 = vsub.f32 %v2942_v9, %v584_v40  ;;  %v684_v9 = vsub.f32 %v2980_v1, %v588_v2  ;;  %v3780_v2 = vld [vmem:[#allocation30_spill] sm:$0xff] }
 0x110   : > { %v756_v39 = vpack.c.bf16 %v680_v60, %v678_v0  ;;  %v3777_v0 = vld [vmem:[#allocation25_spill] sm:$0xff] }
 0x113   : > { %1083 = vmatmul.mubr.bf16.gmra.mxu1 %v3755_v13  ;;  %1308 = vmatmul.mubr.bf16.gmra.mxu0 %v2658_v55  ;;  %v3763_v55 = vld [vmem:[#allocation50_spill] sm:$0xff] }
 0x114   : > { %1090 = vmatprep.mubr.bf16.mxu1 %v3758_v19  ;;  %1315 = vmatprep.mubr.bf16.mxu0 %v2704_v30  ;;  %v3765_v51 = vpack.c.bf16 %v3763_v55, %v3764_v45  ;;  %v3766_v30 = vpack.c.bf16 %v2824_v17, %v2822_v29  ;;  %v3774_v19 = vld [vmem:[#allocation23_spill] sm:$0xff]  ;;  %v3776_v55 = vld [vmem:[#allocation34_spill] sm:$0xff] }
 0x115   : > { %v602_v45 = vunpack.c.l.bf16 %v3776_v55 }
 0x11b   : > { %1091 = vmatmul.mubr.bf16.gmra.mxu1 %v3761_v24  ;;  %1316 = vmatmul.mubr.bf16.gmra.mxu0 %v2706_v42  ;;  %v581_v42 = vunpack.c.l.bf16 %v2988_v11  ;;  %v3775_v24 = vld [vmem:[#allocation33_spill] sm:$0xff] }
 0x11c   : > { %1098 = vmatprep.mubr.bf16.mxu1 %v3762_v35  ;;  %1323 = vmatprep.mubr.bf16.mxu0 %v2751_v57  ;;  %v583_v57 = vunpack.c.h.bf16 %v2988_v11  ;;  %v597_v35 = vunpack.c.l.bf16 %v3775_v24  ;;  %v599_v48 = vunpack.c.h.bf16 %v3775_v24 }
 0x11d   : > { %v677_v17 = vsub.f32 %v2968_v63, %v581_v42  ;;  %v681_v63 = vsub.f32 %v3004_v20, %v585_v14  ;;  %v2097_v20 = vld [vmem:[#allocation6 + $0x188] sm:$0xff]  ;;  %v3781_v14 = vld [vmem:[#allocation43_spill] sm:$0xff] }
 0x11e   : > { %v679_v29 = vsub.f32 %v2970_v53, %v583_v57  ;;  %v693_v60 = vsub.f32 %v3777_v0, %v597_v35  ;;  %v3778_v42 = vld [vmem:[#allocation26_spill] sm:$0xff] }
 0x11f   : > { %v695_v57 = vsub.f32 %v3778_v42, %v599_v48  ;;  %v3792_v48 = vld [vmem:[#allocation48_spill] sm:$0xff]  ;;  %v609_v42 = vunpack.c.l.bf16 %v2834_v5 }
 0x120   : > { %v755_v4 = vpack.c.bf16 %v679_v29, %v677_v17 }
 0x123   : > { %1099 = vmatmul.mubr.bf16.gmra.mxu1 %v3765_v51  ;;  %1324 = vmatmul.mubr.bf16.gmra.mxu0 %v2754_v12  ;;  %v3767_v12 = vpack.c.bf16 %v2830_v31, %v2828_v58  ;;  %v590_v58 = vunpack.c.l.bf16 %v3032_v46 }
 0x124   : > { %1106 = vmatprep.mubr.bf16.mxu1 %v3766_v30  ;;  %1331 = vmatprep.mubr.bf16.mxu0 %v2798_v62  ;;  %v682_v62 = vsub.f32 %v2978_v15, %v586_v33 }
 0x125   : > { %v686_v1 = vsub.f32 %v3014_v25, %v590_v58  ;;  %v690_v25 = vsub.f32 %v2097_v20, %v594_v10 }
 0x126   : > { %v758_v31 = vpack.c.bf16 %v684_v9, %v682_v62 }
 0x12b   : > { %1107 = vmatmul.mubr.bf16.gmra.mxu1 %v3767_v12  ;;  %1332 = vmatmul.mubr.bf16.gmra.mxu0 %v2802_v7  ;;  %v592_v7 = vunpack.c.h.bf16 %v3032_v46 }
 0x12c   : > { %1114 = vmatprep.mubr.bf16.mxu1 %v756_v39  ;;  %1339 = vmatprep.mubr.bf16.mxu0 %v2958_v38  ;;  %v683_v38 = vsub.f32 %v3006_v52, %v587_v26  ;;  %v685_v52 = vsub.f32 %v3040_v8, %v589_v27  ;;  %v3771_v8 = vld [vmem:[#allocation15_spill] sm:$0xff]  ;;  %v601_v26 = vunpack.c.l.bf16 %v3781_v14 }
 0x12d   : > { %v688_v15 = vsub.f32 %v3016_v21, %v592_v7  ;;  %v2098_v21 = vld [vmem:[#allocation6 + $0x198] sm:$0xff]  ;;  %v3779_v39 = vld [vmem:[#allocation27_spill] sm:$0xff] }
 0x12e   : > { %v757_v53 = vpack.c.bf16 %v683_v38, %v681_v63  ;;  %v698_v33 = vsub.f32 %v3779_v39, %v602_v45  ;;  %v3782_v7 = vld [vmem:[#allocation44_spill] sm:$0xff] }
 0x12f   : > { %v760_v3 = vpack.c.bf16 %v688_v15, %v686_v1  ;;  %v606_v63 = vunpack.c.l.bf16 %v3782_v7  ;;  %v608_v38 = vunpack.c.h.bf16 %v3782_v7 }
 0x133   : > { %1115 = vmatmul.mubr.bf16.gmra.mxu1 %v755_v4  ;;  %1340 = vmatmul.mubr.bf16.gmra.mxu0 %v2988_v11  ;;  %v596_v11 = vunpack.c.h.bf16 %v3768_v6  ;;  %v763_v4 = vpack.c.bf16 %v695_v57, %v693_v60  ;;  %v611_v57 = vunpack.c.h.bf16 %v2834_v5 }
 0x134   : > { %1122 = vmatprep.mubr.bf16.mxu1 %v758_v31  ;;  %1347 = vmatprep.mubr.bf16.mxu0 %v2996_v56  ;;  %v687_v56 = vsub.f32 %v3044_v18, %v591_v61  ;;  %v689_v18 = vsub.f32 %v3771_v8, %v593_v36  ;;  %v603_v31 = vunpack.c.h.bf16 %v3781_v14  ;;  %v3783_v61 = vld [vmem:[#allocation35_spill] sm:$0xff]  ;;  %v612_v8 = vunpack.c.h.bf16 %v3788_v44 }
 0x135   : > { %v692_v22 = vsub.f32 %v2098_v21, %v596_v11  ;;  %v3785_v11 = vld [vmem:[#allocation37_spill] sm:$0xff]  ;;  %v3787_v36 = vld [vmem:[#allocation51_spill] sm:$0xff] }
 0x136   : > { %v759_v32 = vpack.c.bf16 %v687_v56, %v685_v52  ;;  %v702_v52 = vsub.f32 %v3785_v11, %v606_v63  ;;  %v3786_v56 = vld [vmem:[#allocation38_spill] sm:$0xff]  ;;  %v3797_v11 = vld [vmem:[#allocation61_spill] sm:$0xff] }
 0x137   : > { %v762_v47 = vpack.c.bf16 %v692_v22, %v690_v25  ;;  %v704_v20 = vsub.f32 %v3786_v56, %v608_v38  ;;  %v3796_v38 = vld [vmem:[#allocation56_spill] sm:$0xff]  ;;  %v615_v56 = vunpack.c.h.bf16 %v3797_v11 }
 0x13b   : > { %1123 = vmatmul.mubr.bf16.gmra.mxu1 %v757_v53  ;;  %1348 = vmatmul.mubr.bf16.gmra.mxu0 %v3024_v37  ;;  %v600_v37 = vunpack.c.h.bf16 %v3770_v54 }
 0x13c   : > { %1130 = vmatprep.mubr.bf16.mxu1 %v760_v3  ;;  %1355 = vmatprep.mubr.bf16.mxu0 %v3032_v46  ;;  %v3772_v46 = vld [vmem:[#allocation16_spill] sm:$0xff]  ;;  %v697_v3 = vsub.f32 %v3783_v61, %v601_v26 }
 0x13d   : > { %v691_v13 = vsub.f32 %v3772_v46, %v595_v41  ;;  %v696_v59 = vsub.f32 %v3774_v19, %v600_v37  ;;  %v605_v41 = vunpack.c.l.bf16 %v3787_v36  ;;  %v610_v37 = vunpack.c.l.bf16 %v3788_v44 }
 0x13f   : > { %v761_v28 = vpack.c.bf16 %v691_v13, %v689_v18  ;;  %v764_v40 = vpack.c.bf16 %v696_v59, %v694_v49  ;;  %v3789_v49 = vld [vmem:[#allocation45_spill] sm:$0xff]  ;;  %v3790_v59 = vld [vmem:[#allocation46_spill] sm:$0xff] }
 0x140   : > { %v701_v19 = vsub.f32 %v3789_v49, %v605_v41 }
 0x143   : > { %1131 = vmatmul.mubr.bf16.gmra.mxu1 %v759_v32  ;;  %1356 = vmatmul.mubr.bf16.gmra.mxu0 %v3052_v50  ;;  %v604_v50 = vunpack.c.h.bf16 %v3776_v55 }
 0x144   : > { %1138 = vmatprep.mubr.bf16.mxu1 %v762_v47  ;;  %1363 = vmatprep.mubr.bf16.mxu0 %v3768_v6  ;;  %v3784_v6 = vld [vmem:[#allocation36_spill] sm:$0xff]  ;;  %v607_v47 = vunpack.c.h.bf16 %v3787_v36 }
 0x145   : > { %v700_v12 = vsub.f32 %v3780_v2, %v604_v50  ;;  %v699_v10 = vsub.f32 %v3784_v6, %v603_v31  ;;  %v616_v2 = vunpack.c.h.bf16 %v2840_v43  ;;  %v3794_v31 = vld [vmem:[#allocation54_spill] sm:$0xff] }
 0x147   : > { %v766_v58 = vpack.c.bf16 %v700_v12, %v698_v33  ;;  %v614_v33 = vunpack.c.l.bf16 %v2840_v43 }
 0x14b   : > { %v3177_v51 = vpop.f32.mrf.mxu0  ;;  %v3179_v30 = vpop.f32.mrf.mxu1  ;;  %1139 = vmatmul.mubr.bf16.gmra.mxu1 %v761_v28  ;;  %1364 = vmatmul.mubr.bf16.gmra.mxu0 %v3769_v34  ;;  %v765_v34 = vpack.c.bf16 %v699_v10, %v697_v3  ;;  %v703_v28 = vsub.f32 %v3790_v59, %v607_v47 }
 0x14c   : > { %1146 = vmatprep.mubr.bf16.mxu1 %v764_v40  ;;  %1371 = vmatprep.mubr.bf16.mxu0 %v3770_v54  ;;  %v768_v54 = vpack.c.bf16 %v704_v20, %v702_v52  ;;  %v708_v40 = vsub.f32 %v3792_v48, %v612_v8  ;;  %v613_v52 = vunpack.c.l.bf16 %v3797_v11  ;;  %v3800_v8 = vld [vmem:[#allocation58_spill] sm:$0xff] }
 0x14d   : > { %v821_v17 = vpop.f32.mrf.mxu0  ;;  %v917_v29 = vpop.f32.mrf.mxu1  ;;  %v767_v60 = vpack.c.bf16 %v703_v28, %v701_v19  ;;  %v3802_v19 = vld [vmem:[#allocation60_spill] sm:$0xff] }
 0x14f   : > { %v3187_v62 = vpop.f32.mrf.mxu0  ;;  %v3189_v9 = vpop.f32.mrf.mxu1 }
 0x151   : > { %v824_v1 = vpop.f32.mrf.mxu0  ;;  %v920_v15 = vpop.f32.mrf.mxu1 }
 0x152   : > { %v712_v1 = vsub.f32 %v3796_v38, %v616_v2 }
 0x153   : > { %v3195_v53 = vpop.f32.mrf.mxu0  ;;  %v3197_v27 = vpop.f32.mrf.mxu1  ;;  %1147 = vmatmul.mubr.bf16.gmra.mxu1 %v763_v4  ;;  %1372 = vmatmul.mubr.bf16.gmra.mxu0 %v3775_v24  ;;  %v3791_v24 = vld [vmem:[#allocation47_spill] sm:$0xff] }
 0x154   : > { %1154 = vmatprep.mubr.bf16.mxu1 %v766_v58  ;;  %1379 = vmatprep.mubr.bf16.mxu0 %v3776_v55  ;;  %v706_v35 = vsub.f32 %v3791_v24, %v610_v37  ;;  %v707_v58 = vsub.f32 %v3794_v31, %v611_v57 }
 0x155   : > { %v829_v25 = vpop.f32.mrf.mxu0  ;;  %v925_v21 = vpop.f32.mrf.mxu1 }
 0x156   : > { %v770_v39 = vpack.c.bf16 %v708_v40, %v706_v35  ;;  %v3798_v25 = vld [vmem:[#allocation62_spill] sm:$0xff] }
 0x157   : > { %v3205_v22 = vpop.f32.mrf.mxu0  ;;  %v3207_v32 = vpop.f32.mrf.mxu1  ;;  %v618_v21 = vunpack.c.l.bf16 %v3798_v25 }
 0x159   : > { %v832_v18 = vpop.f32.mrf.mxu0  ;;  %v928_v46 = vpop.f32.mrf.mxu1 }
 0x15a   : > { %v711_v18 = vsub.f32 %v3800_v8, %v615_v56  ;;  %v3801_v46 = vld [vmem:[#allocation59_spill] sm:$0xff]  ;;  %v3809_v56 = vld [vmem:[#allocation73_spill] sm:$0xff] }
 0x15b   : > { %v3213_v13 = vpop.f32.mrf.mxu0  ;;  %v3215_v23 = vpop.f32.mrf.mxu1  ;;  %1155 = vmatmul.mubr.bf16.gmra.mxu1 %v765_v34  ;;  %1380 = vmatmul.mubr.bf16.gmra.mxu0 %v3781_v14  ;;  %v3793_v14 = vld [vmem:[#allocation53_spill] sm:$0xff]  ;;  %v620_v34 = vunpack.c.h.bf16 %v3798_v25  ;;  %v714_v49 = vsub.f32 %v3801_v46, %v618_v21 }
 0x15c   : > { %1162 = vmatprep.mubr.bf16.mxu1 %v768_v54  ;;  %1387 = vmatprep.mubr.bf16.mxu0 %v3782_v7  ;;  %v705_v26 = vsub.f32 %v3793_v14, %v609_v42  ;;  %v3795_v7 = vld [vmem:[#allocation55_spill] sm:$0xff]  ;;  %v3804_v42 = vld [vmem:[#allocation68_spill] sm:$0xff] }
 0x15d   : > { %v837_v55 = vpop.f32.mrf.mxu0  ;;  %v933_v45 = vpop.f32.mrf.mxu1  ;;  %v710_v63 = vsub.f32 %v3795_v7, %v614_v33  ;;  %v716_v59 = vsub.f32 %v3802_v19, %v620_v34  ;;  %v622_v57 = vunpack.c.l.bf16 %v3804_v42  ;;  %v3810_v34 = vld [vmem:[#allocation74_spill] sm:$0xff] }
 0x15e   : > { %v769_v10 = vpack.c.bf16 %v707_v58, %v705_v26  ;;  %v3803_v55 = vld [vmem:[#allocation67_spill] sm:$0xff]  ;;  %v3806_v26 = vld [vmem:[#allocation64_spill] sm:$0xff]  ;;  %v3807_v58 = vld [vmem:[#allocation65_spill] sm:$0xff] }
 0x15f   : > { %v3223_v50 = vpop.f32.mrf.mxu0  ;;  %v3225_v0 = vpop.f32.mrf.mxu1  ;;  %v772_v20 = vpack.c.bf16 %v712_v1, %v710_v63  ;;  %v619_v45 = vunpack.c.h.bf16 %v3803_v55  ;;  %v718_v7 = vsub.f32 %v3807_v58, %v622_v57  ;;  %v3808_v63 = vld [vmem:[#allocation66_spill] sm:$0xff] }
 0x161   : > { %v840_v12 = vpop.f32.mrf.mxu0  ;;  %v936_v17 = vpop.f32.mrf.mxu1  ;;  %v715_v31 = vsub.f32 %v3806_v26, %v619_v45 }
 0x162   : > { %v3805_v17 = vld [vmem:[#allocation63_spill] sm:$0xff] }
 0x163   : > { %v3231_v29 = vpop.f32.mrf.mxu0  ;;  %v3233_v4 = vpop.f32.mrf.mxu1  ;;  %1163 = vmatmul.mubr.bf16.gmra.mxu1 %v767_v60  ;;  %1388 = vmatmul.mubr.bf16.gmra.mxu0 %v3787_v36  ;;  %v774_v60 = vpack.c.bf16 %v716_v59, %v714_v49  ;;  %v3812_v49 = vld [vmem:[#allocation70_spill] sm:$0xff]  ;;  %v3813_v59 = vld [vmem:[#allocation71_spill] sm:$0xff] }
 0x164   : > { %1170 = vmatprep.mubr.bf16.mxu1 %v770_v39  ;;  %1395 = vmatprep.mubr.bf16.mxu0 %v3788_v44  ;;  %v3799_v44 = vld [vmem:[#allocation57_spill] sm:$0xff] }
 0x165   : > { %v845_v15 = vpop.f32.mrf.mxu0  ;;  %v941_v61 = vpop.f32.mrf.mxu1  ;;  %v709_v37 = vsub.f32 %v3799_v44, %v613_v52 }
 0x167   : > { %v3241_v3 = vpop.f32.mrf.mxu0  ;;  %v3243_v6 = vpop.f32.mrf.mxu1  ;;  %v771_v40 = vpack.c.bf16 %v711_v18, %v709_v37  ;;  %v3811_v18 = vld [vmem:[#allocation69_spill] sm:$0xff] }
 0x169   : > { %v848_v36 = vpop.f32.mrf.mxu0  ;;  %v944_v41 = vpop.f32.mrf.mxu1 }
 0x16a   : > { %v626_v36 = vunpack.c.l.bf16 %v3810_v34 }
 0x16b   : > { %v3249_v47 = vpop.f32.mrf.mxu0  ;;  %v3251_v54 = vpop.f32.mrf.mxu1  ;;  %1171 = vmatmul.mubr.bf16.gmra.mxu1 %v769_v10  ;;  %1396 = vmatmul.mubr.bf16.gmra.mxu0 %v2834_v5  ;;  %v617_v5 = vunpack.c.l.bf16 %v3803_v55 }
 0x16c   : > { %1178 = vmatprep.mubr.bf16.mxu1 %v772_v20  ;;  %1403 = vmatprep.mubr.bf16.mxu0 %v2840_v43  ;;  %v624_v43 = vunpack.c.h.bf16 %v3804_v42  ;;  %v623_v20 = vunpack.c.h.bf16 %v3809_v56 }
 0x16d   : > { %v853_v28 = vpop.f32.mrf.mxu0  ;;  %v949_v24 = vpop.f32.mrf.mxu1  ;;  %v713_v14 = vsub.f32 %v3805_v17, %v617_v5 }
 0x16e   : > { %v720_v38 = vsub.f32 %v3808_v63, %v624_v43  ;;  %v719_v19 = vsub.f32 %v3812_v49, %v623_v20  ;;  %v722_v28 = vsub.f32 %v3813_v59, %v626_v36  ;;  %v3814_v24 = vld [vmem:[#allocation72_spill] sm:$0xff]  ;;  %v3821_v49 = vld [vmem:[#allocation85_spill] sm:$0xff] }
 0x16f   : > { %v3259_v35 = vpop.f32.mrf.mxu0  ;;  %v3261_v48 = vpop.f32.mrf.mxu1  ;;  %v773_v52 = vpack.c.bf16 %v715_v31, %v713_v14  ;;  %v3816_v14 = vld [vmem:[#allocation80_spill] sm:$0xff] }
 0x170   : > { %v776_v21 = vpack.c.bf16 %v720_v38, %v718_v7  ;;  %v630_v26 = vunpack.c.l.bf16 %v3816_v14  ;;  %v3817_v38 = vld [vmem:[#allocation75_spill] sm:$0xff] }
 0x171   : > { %v856_v39 = vpop.f32.mrf.mxu0  ;;  %v952_v33 = vpop.f32.mrf.mxu1 }
 0x172   : > { %v3815_v39 = vld [vmem:[#allocation79_spill] sm:$0xff] }
 0x173   : > { %v3267_v2 = vpop.f32.mrf.mxu0  ;;  %v3269_v12 = vpop.f32.mrf.mxu1  ;;  %1179 = vmatmul.mubr.bf16.gmra.mxu1 %v771_v40  ;;  %1404 = vmatmul.mubr.bf16.gmra.mxu0 %v3797_v11  ;;  %v621_v11 = vunpack.c.l.bf16 %v3809_v56  ;;  %v627_v33 = vunpack.c.h.bf16 %v3815_v39 }
 0x174   : > { %1186 = vmatprep.mubr.bf16.mxu1 %v774_v60  ;;  %1411 = vmatprep.mubr.bf16.mxu0 %v3798_v25  ;;  %v628_v25 = vunpack.c.h.bf16 %v3810_v34 }
 0x175   : > { %v861_v1 = vpop.f32.mrf.mxu0  ;;  %v957_v15 = vpop.f32.mrf.mxu1  ;;  %v717_v46 = vsub.f32 %v3811_v18, %v621_v11  ;;  %v3819_v11 = vld [vmem:[#allocation77_spill] sm:$0xff] }
 0x176   : > { %v724_v40 = vsub.f32 %v3814_v24, %v628_v25  ;;  %v3818_v15 = vld [vmem:[#allocation76_spill] sm:$0xff]  ;;  %v726_v20 = vsub.f32 %v3819_v11, %v630_v26 }
 0x177   : > { %v3277_v61 = vpop.f32.mrf.mxu0  ;;  %v3279_v10 = vpop.f32.mrf.mxu1  ;;  %v775_v43 = vpack.c.bf16 %v719_v19, %v717_v46  ;;  %v631_v19 = vunpack.c.h.bf16 %v3821_v49 }
 0x178   : > { %v778_v17 = vpack.c.bf16 %v724_v40, %v722_v28  ;;  %v3822_v28 = vld [vmem:[#allocation86_spill] sm:$0xff] }
 0x179   : > { %v864_v41 = vpop.f32.mrf.mxu0  ;;  %v960_v44 = vpop.f32.mrf.mxu1  ;;  %v634_v24 = vunpack.c.l.bf16 %v3822_v28 }
 0x17b   : > { %v3285_v37 = vpop.f32.mrf.mxu0  ;;  %v3287_v8 = vpop.f32.mrf.mxu1  ;;  %1187 = vmatmul.mubr.bf16.gmra.mxu1 %v773_v52  ;;  %1412 = vmatmul.mubr.bf16.gmra.mxu0 %v3803_v55  ;;  %v625_v55 = vunpack.c.l.bf16 %v3815_v39  ;;  %v723_v52 = vsub.f32 %v3818_v15, %v627_v33 }
 0x17c   : > { %1194 = vmatprep.mubr.bf16.mxu1 %v776_v21  ;;  %1419 = vmatprep.mubr.bf16.mxu0 %v3804_v42  ;;  %v632_v42 = vunpack.c.h.bf16 %v3816_v14  ;;  %v3820_v21 = vld [vmem:[#allocation78_spill] sm:$0xff] }
 0x17d   : > { %v869_v5 = vpop.f32.mrf.mxu0  ;;  %v965_v45 = vpop.f32.mrf.mxu1  ;;  %v721_v1 = vsub.f32 %v3817_v38, %v625_v55  ;;  %v3823_v55 = vld [vmem:[#allocation81_spill] sm:$0xff] }
 0x17e   : > { %v728_v36 = vsub.f32 %v3820_v21, %v632_v42  ;;  %v3825_v42 = vld [vmem:[#allocation83_spill] sm:$0xff] }
 0x17f   : > { %v3295_v60 = vpop.f32.mrf.mxu0  ;;  %v3297_v57 = vpop.f32.mrf.mxu1  ;;  %v777_v46 = vpack.c.bf16 %v723_v52, %v721_v1  ;;  %v3827_v21 = vld [vmem:[#allocation91_spill] sm:$0xff] }
 0x180   : > { %v780_v59 = vpack.c.bf16 %v728_v36, %v726_v20  ;;  %v635_v36 = vunpack.c.h.bf16 %v3827_v21 }
 0x181   : > { %v872_v31 = vpop.f32.mrf.mxu0  ;;  %v968_v58 = vpop.f32.mrf.mxu1 }
 0x182   : > { %v730_v31 = vsub.f32 %v3825_v42, %v634_v24  ;;  %v3826_v58 = vld [vmem:[#allocation84_spill] sm:$0xff] }
 0x183   : > { %v3303_v7 = vpop.f32.mrf.mxu0  ;;  %v3305_v63 = vpop.f32.mrf.mxu1  ;;  %1195 = vmatmul.mubr.bf16.gmra.mxu1 %v775_v43  ;;  %1420 = vmatmul.mubr.bf16.gmra.mxu0 %v3809_v56  ;;  %v629_v56 = vunpack.c.l.bf16 %v3821_v49 }
 0x184   : > { %1202 = vmatprep.mubr.bf16.mxu1 %v778_v17  ;;  %1427 = vmatprep.mubr.bf16.mxu0 %v3810_v34  ;;  %v636_v34 = vunpack.c.h.bf16 %v3822_v28  ;;  %v3824_v17 = vld [vmem:[#allocation82_spill] sm:$0xff] }
 0x185   : > { %v877_v25 = vpop.f32.mrf.mxu0  ;;  %v973_v41 = vpop.f32.mrf.mxu1  ;;  %v725_v33 = vsub.f32 %v3823_v55, %v629_v56  ;;  %v727_v26 = vsub.f32 %v3824_v17, %v631_v19 }
 0x186   : > { %v732_v38 = vsub.f32 %v3826_v58, %v636_v34  ;;  %v3828_v41 = vld [vmem:[#allocation92_spill] sm:$0xff]  ;;  %v3829_v34 = vld [vmem:[#allocation87_spill] sm:$0xff] }
 0x187   : > { %v3313_v44 = vpop.f32.mrf.mxu0  ;;  %v3315_v18 = vpop.f32.mrf.mxu1  ;;  %v779_v20 = vpack.c.bf16 %v727_v26, %v725_v33  ;;  %v3831_v33 = vld [vmem:[#allocation89_spill] sm:$0xff]  ;;  %v3832_v26 = vld [vmem:[#allocation90_spill] sm:$0xff] }
 0x188   : > { %v782_v25 = vpack.c.bf16 %v732_v38, %v730_v31 }
 0x189   : > { %v880_v40 = vpop.f32.mrf.mxu0  ;;  %v976_v5 = vpop.f32.mrf.mxu1 }
 0x18a   : > { %v3830_v5 = vld [vmem:[#allocation88_spill] sm:$0xff] }
 0x18b   : > { %v3321_v45 = vpop.f32.mrf.mxu0  ;;  %v3323_v43 = vpop.f32.mrf.mxu1  ;;  %1203 = vmatmul.mubr.bf16.gmra.mxu1 %v777_v46  ;;  %1428 = vmatmul.mubr.bf16.gmra.mxu0 %v3815_v39  ;;  %v633_v39 = vunpack.c.l.bf16 %v3827_v21  ;;  %v638_v46 = vunpack.c.l.bf16 %v3828_v41  ;;  %v731_v55 = vsub.f32 %v3830_v5, %v635_v36 }
 0x18c   : > { %1210 = vmatprep.mubr.bf16.mxu1 %v780_v59  ;;  %1435 = vmatprep.mubr.bf16.mxu0 %v3816_v14  ;;  %v640_v14 = vunpack.c.h.bf16 %v3828_v41 }
 0x18d   : > { %v885_v1 = vpop.f32.mrf.mxu0  ;;  %v981_v15 = vpop.f32.mrf.mxu1  ;;  %v729_v40 = vsub.f32 %v3829_v34, %v633_v39  ;;  %v734_v17 = vsub.f32 %v3831_v33, %v638_v46  ;;  %v3833_v46 = vld [vmem:[#allocation93_spill] sm:$0xff] }
 0x18e   : > { %v736_v42 = vsub.f32 %v3832_v26, %v640_v14 }
 0x18f   : > { %v3331_v52 = vpop.f32.mrf.mxu0  ;;  %v3333_v11 = vpop.f32.mrf.mxu1  ;;  %v781_v15 = vpack.c.bf16 %v731_v55, %v729_v40 }
 0x190   : > { %v784_v39 = vpack.c.bf16 %v736_v42, %v734_v17 }
 0x191   : > { %v888_v56 = vpop.f32.mrf.mxu0  ;;  %v984_v19 = vpop.f32.mrf.mxu1 }
 0x192   : > { %v3834_v19 = vld [vmem:[#allocation94_spill] sm:$0xff] }
 0x193   : > { %v3339_v59 = vpop.f32.mrf.mxu0  ;;  %v3341_v24 = vpop.f32.mrf.mxu1  ;;  %1211 = vmatmul.mubr.bf16.gmra.mxu1 %v779_v20  ;;  %1436 = vmatmul.mubr.bf16.gmra.mxu0 %v3821_v49  ;;  %v637_v49 = vunpack.c.l.bf16 %v3056_v16  ;;  %v639_v20 = vunpack.c.h.bf16 %v3056_v16 }
 0x194   : > { %1218 = vmatprep.mubr.bf16.mxu1 %v782_v25  ;;  %1443 = vmatprep.mubr.bf16.mxu0 %v3822_v28 }
 0x195   : > { %v893_v31 = vpop.f32.mrf.mxu0  ;;  %v989_v58 = vpop.f32.mrf.mxu1  ;;  %v733_v14 = vsub.f32 %v3833_v46, %v637_v49  ;;  %v735_v34 = vsub.f32 %v3834_v19, %v639_v20 }
 0x197   : > { %v3349_v38 = vpop.f32.mrf.mxu0  ;;  %v3351_v1 = vpop.f32.mrf.mxu1  ;;  %v783_v17 = vpack.c.bf16 %v735_v34, %v733_v14 }
 0x199   : > { %v896_v36 = vpop.f32.mrf.mxu0  ;;  %v992_v25 = vpop.f32.mrf.mxu1 }
 0x19b   : > { %v3355_v56 = vpop.f32.mrf.mxu0  ;;  %v3357_v28 = vpop.f32.mrf.mxu1  ;;  %1219 = vmatmul.mubr.bf16.gmra.mxu1 %v781_v15  ;;  %1444 = vmatmul.mubr.bf16.gmra.mxu0 %v3827_v21 }
 0x19c   : > { %1226 = vmatprep.mubr.bf16.mxu1 %v784_v39  ;;  %1451 = vmatprep.mubr.bf16.mxu0 %v3828_v41 }
 0x19d   : > { %v901_v40 = vpop.f32.mrf.mxu0  ;;  %v997_v5 = vpop.f32.mrf.mxu1 }
 0x19f   : > { %v3363_v55 = vpop.f32.mrf.mxu0  ;;  %v3365_v33 = vpop.f32.mrf.mxu1 }
 0x1a1   : > { %v904_v26 = vpop.f32.mrf.mxu0  ;;  %v1000_v42 = vpop.f32.mrf.mxu1 }
 0x1a3   : > { %v3367_v31 = vpop.f32.mrf.mxu0  ;;  %v3369_v58 = vpop.f32.mrf.mxu1  ;;  %1227 = vmatmul.mubr.bf16.gmra.mxu1 %v783_v17  ;;  %1452 = vmatmul.mubr.bf16.gmra.mxu0 %v3056_v16 }
 0x1a4   : > { %3835 = vst [vmem:[#allocation14_spill] sm:$0xff] %v3369_v58 }
 0x1a5   : > { %v909_v21 = vpop.f32.mrf.mxu0  ;;  %v1005_v15 = vpop.f32.mrf.mxu1 }
 0x1a7   : > { %v3372_v49 = vpop.f32.mrf.mxu0  ;;  %v3374_v41 = vpop.f32.mrf.mxu1 }
 0x1a8   : > { %3836 = vst [vmem:[#allocation18_spill] sm:$0xff] %v3374_v41 }
 0x1a9   : > { %v912_v20 = vpop.f32.mrf.mxu0  ;;  %v1008_v39 = vpop.f32.mrf.mxu1 }
 0x1ab   : > { %v1044_v36 = vpop.f32.mrf.mxu1  ;;  %v1269_v25 = vpop.f32.mrf.mxu0 }
 0x1ac   : > { %v1045_v46 = vadd.f32 %v1044_v36, %v3177_v51 }
 0x1ad   : > { %v1046_v14 = vpop.f32.mrf.mxu1  ;;  %v1271_v19 = vpop.f32.mrf.mxu0 }
 0x1ae   : > { %v1460_v34 = vadd.f32 %v1269_v25, %v1045_v46 }
 0x1af   : > { %v1047_v40 = vpop.f32.mrf.mxu1  ;;  %v1272_v5 = vpop.f32.mrf.mxu0 }
 0x1b0   : > { %v1048_v17 = vadd.f32 %v1047_v40, %v3187_v62  ;;  %1703 = vxpose.xlu0.b32.start [1/16] %v1460_v34, 128 }
 0x1b1   : > { %v1049_v16 = vpop.f32.mrf.mxu1  ;;  %v1274_v26 = vpop.f32.mrf.mxu0 }
 0x1b2   : > { %v1461_v42 = vadd.f32 %v1272_v5, %v1048_v17 }
 0x1b3   : > { %v1052_v21 = vpop.f32.mrf.mxu1  ;;  %v1277_v15 = vpop.f32.mrf.mxu0 }
 0x1b4   : > { %v1053_v20 = vadd.f32 %v1052_v21, %v3195_v53  ;;  %1704 = vxpose.xlu0.b32.cont [2/16] %v1461_v42, 128 }
 0x1b5   : > { %v1054_v39 = vpop.f32.mrf.mxu1  ;;  %v1279_v41 = vpop.f32.mrf.mxu0 }
 0x1b6   : > { %v1462_v58 = vadd.f32 %v1277_v15, %v1053_v20 }
 0x1b7   : > { %v1055_v51 = vpop.f32.mrf.mxu1  ;;  %v1280_v36 = vpop.f32.mrf.mxu0 }
 0x1b8   : > { %v1056_v25 = vadd.f32 %v1055_v51, %v3205_v22  ;;  %1705 = vxpose.xlu0.b32.cont [3/16] %v1462_v58, 128 }
 0x1b9   : > { %v1057_v46 = vpop.f32.mrf.mxu1  ;;  %v1282_v14 = vpop.f32.mrf.mxu0 }
 0x1ba   : > { %v1463_v62 = vadd.f32 %v1280_v36, %v1056_v25 }
 0x1bb   : > { %v1060_v19 = vpop.f32.mrf.mxu1  ;;  %v1285_v34 = vpop.f32.mrf.mxu0 }
 0x1bc   : > { %v1061_v40 = vadd.f32 %v1060_v19, %v3213_v13  ;;  %1706 = vxpose.xlu0.b32.cont [4/16] %v1463_v62, 128 }
 0x1bd   : > { %v1062_v5 = vpop.f32.mrf.mxu1  ;;  %v1287_v17 = vpop.f32.mrf.mxu0 }
 0x1be   : > { %v1464_v53 = vadd.f32 %v1285_v34, %v1061_v40 }
 0x1bf   : > { %v1063_v16 = vpop.f32.mrf.mxu1  ;;  %v1288_v26 = vpop.f32.mrf.mxu0 }
 0x1c0   : > { %v1064_v41 = vadd.f32 %v1063_v16, %v3223_v50  ;;  %1707 = vxpose.xlu0.b32.cont [5/16] %v1464_v53, 128 }
 0x1c1   : > { %v1065_v42 = vpop.f32.mrf.mxu1  ;;  %v1290_v21 = vpop.f32.mrf.mxu0 }
 0x1c2   : > { %v1465_v22 = vadd.f32 %v1288_v26, %v1064_v41 }
 0x1c3   : > { %v1068_v58 = vpop.f32.mrf.mxu1  ;;  %v1293_v15 = vpop.f32.mrf.mxu0 }
 0x1c4   : > { %v1069_v20 = vadd.f32 %v1068_v58, %v3231_v29  ;;  %1708 = vxpose.xlu0.b32.cont [6/16] %v1465_v22, 128 }
 0x1c5   : > { %v1070_v39 = vpop.f32.mrf.mxu1  ;;  %v1295_v51 = vpop.f32.mrf.mxu0 }
 0x1c6   : > { %v1466_v13 = vadd.f32 %v1293_v15, %v1069_v20 }
 0x1c7   : > { %v1071_v36 = vpop.f32.mrf.mxu1  ;;  %v1296_v25 = vpop.f32.mrf.mxu0 }
 0x1c8   : > { %v1072_v46 = vadd.f32 %v1071_v36, %v3241_v3  ;;  %1709 = vxpose.xlu0.b32.cont [7/16] %v1466_v13, 128 }
 0x1c9   : > { %v1073_v14 = vpop.f32.mrf.mxu1  ;;  %v1298_v62 = vpop.f32.mrf.mxu0 }
 0x1ca   : > { %v1467_v50 = vadd.f32 %v1296_v25, %v1072_v46 }
 0x1cb   : > { %v1076_v19 = vpop.f32.mrf.mxu1  ;;  %v1301_v34 = vpop.f32.mrf.mxu0 }
 0x1cc   : > { %v1077_v40 = vadd.f32 %v1076_v19, %v3249_v47  ;;  %1710 = vxpose.xlu0.b32.cont [8/16] %v1467_v50, 128 }
 0x1cd   : > { %v1078_v5 = vpop.f32.mrf.mxu1  ;;  %v1303_v17 = vpop.f32.mrf.mxu0 }
 0x1ce   : > { %v1468_v29 = vadd.f32 %v1301_v34, %v1077_v40 }
 0x1cf   : > { %v1079_v53 = vpop.f32.mrf.mxu1  ;;  %v1304_v16 = vpop.f32.mrf.mxu0 }
 0x1d0   : > { %v1080_v26 = vadd.f32 %v1079_v53, %v3259_v35  ;;  %1711 = vxpose.xlu0.b32.cont [9/16] %v1468_v29, 128 }
 0x1d1   : > { %v1081_v41 = vpop.f32.mrf.mxu1  ;;  %v1306_v42 = vpop.f32.mrf.mxu0 }
 0x1d2   : > { %v1469_v3 = vadd.f32 %v1304_v16, %v1080_v26 }
 0x1d3   : > { %v1084_v21 = vpop.f32.mrf.mxu1  ;;  %v1309_v22 = vpop.f32.mrf.mxu0 }
 0x1d4   : > { %v1085_v58 = vadd.f32 %v1084_v21, %v3267_v2  ;;  %1712 = vxpose.xlu0.b32.cont [10/16] %v1469_v3, 128 }
 0x1d5   : > { %v1086_v15 = vpop.f32.mrf.mxu1  ;;  %v1311_v20 = vpop.f32.mrf.mxu0 }
 0x1d6   : > { %v1470_v47 = vadd.f32 %v1309_v22, %v1085_v58 }
 0x1d7   : > { %v1087_v39 = vpop.f32.mrf.mxu1  ;;  %v1312_v51 = vpop.f32.mrf.mxu0 }
 0x1d8   : > { %v1088_v13 = vadd.f32 %v1087_v39, %v3277_v61  ;;  %1713 = vxpose.xlu0.b32.cont [11/16] %v1470_v47, 128 }
 0x1d9   : > { %v1089_v36 = vpop.f32.mrf.mxu1  ;;  %v1314_v25 = vpop.f32.mrf.mxu0 }
 0x1da   : > { %v1471_v35 = vadd.f32 %v1312_v51, %v1088_v13 }
 0x1db   : > { %v1092_v46 = vpop.f32.mrf.mxu1  ;;  %v1317_v14 = vpop.f32.mrf.mxu0 }
 0x1dc   : > { %v1093_v62 = vadd.f32 %v1092_v46, %v3285_v37  ;;  %1714 = vxpose.xlu0.b32.cont [12/16] %v1471_v35, 128 }
 0x1dd   : > { %v1094_v50 = vpop.f32.mrf.mxu1  ;;  %v1319_v19 = vpop.f32.mrf.mxu0 }
 0x1de   : > { %v1472_v2 = vadd.f32 %v1317_v14, %v1093_v62 }
 0x1df   : > { %v1095_v34 = vpop.f32.mrf.mxu1  ;;  %v1320_v40 = vpop.f32.mrf.mxu0 }
 0x1e0   : > { %v1096_v5 = vadd.f32 %v1095_v34, %v3295_v60  ;;  %1715 = vxpose.xlu0.b32.cont [13/16] %v1472_v2, 128 }
 0x1e1   : > { %v1097_v17 = vpop.f32.mrf.mxu1  ;;  %v1322_v29 = vpop.f32.mrf.mxu0 }
 0x1e2   : > { %v1473_v61 = vadd.f32 %v1320_v40, %v1096_v5 }
 0x1e3   : > { %v1100_v53 = vpop.f32.mrf.mxu1  ;;  %v1325_v16 = vpop.f32.mrf.mxu0 }
 0x1e4   : > { %v1101_v26 = vadd.f32 %v1100_v53, %v3303_v7  ;;  %1716 = vxpose.xlu0.b32.cont [14/16] %v1473_v61, 128 }
 0x1e5   : > { %v1102_v41 = vpop.f32.mrf.mxu1  ;;  %v1327_v42 = vpop.f32.mrf.mxu0 }
 0x1e6   : > { %v1474_v37 = vadd.f32 %v1325_v16, %v1101_v26 }
 0x1e7   : > { %v1103_v3 = vpop.f32.mrf.mxu1  ;;  %v1328_v21 = vpop.f32.mrf.mxu0 }
 0x1e8   : > { %v1104_v22 = vadd.f32 %v1103_v3, %v3313_v44  ;;  %1717 = vxpose.xlu0.b32.cont [15/16] %v1474_v37, 128 }
 0x1e9   : > { %v1105_v58 = vpop.f32.mrf.mxu1  ;;  %v1330_v15 = vpop.f32.mrf.mxu0 }
 0x1ea   : > { %v1475_v60 = vadd.f32 %v1328_v21, %v1104_v22 }
 0x1eb   : > { %v1108_v20 = vpop.f32.mrf.mxu1  ;;  %v1333_v47 = vpop.f32.mrf.mxu0 }
 0x1ec   : > { %v1109_v39 = vadd.f32 %v1108_v20, %v3321_v45  ;;  %1718 = vxpose.xlu0.b32.end [16/16] %v1475_v60, 128 }
 0x1ed   : > { %v1110_v51 = vpop.f32.mrf.mxu1  ;;  %v1335_v13 = vpop.f32.mrf.mxu0 }
 0x1ee   : > { %v1476_v7 = vadd.f32 %v1333_v47, %v1109_v39 }
 0x1ef   : > { %v1111_v36 = vpop.f32.mrf.mxu1  ;;  %v1336_v25 = vpop.f32.mrf.mxu0 }
 0x1f0   : > { %v1112_v35 = vadd.f32 %v1111_v36, %v3331_v52  ;;  %1735 = vxpose.xlu1.b32.start [1/16] %v1476_v7, 128 }
 0x1f1   : > { %v1113_v46 = vpop.f32.mrf.mxu1  ;;  %v1338_v14 = vpop.f32.mrf.mxu0 }
 0x1f2   : > { %v1477_v44 = vadd.f32 %v1336_v25, %v1112_v35 }
 0x1f3   : > { %v1116_v62 = vpop.f32.mrf.mxu1  ;;  %v1341_v50 = vpop.f32.mrf.mxu0 }
 0x1f4   : > { %v1117_v19 = vadd.f32 %v1116_v62, %v3339_v59  ;;  %1736 = vxpose.xlu1.b32.cont [2/16] %v1477_v44, 128 }
 0x1f5   : > { %v1118_v2 = vpop.f32.mrf.mxu1  ;;  %v1343_v34 = vpop.f32.mrf.mxu0 }
 0x1f6   : > { %v1478_v45 = vadd.f32 %v1341_v50, %v1117_v19 }
 0x1f7   : > { %v1119_v40 = vpop.f32.mrf.mxu1  ;;  %v1344_v5 = vpop.f32.mrf.mxu0 }
 0x1f8   : > { %v1120_v17 = vadd.f32 %v1119_v40, %v3349_v38  ;;  %1737 = vxpose.xlu1.b32.cont [3/16] %v1478_v45, 128 }
 0x1f9   : > { %v1121_v29 = vpop.f32.mrf.mxu1  ;;  %v1346_v61 = vpop.f32.mrf.mxu0 }
 0x1fa   : > { %v1479_v52 = vadd.f32 %v1344_v5, %v1120_v17 }
 0x1fb   : > { %v1124_v53 = vpop.f32.mrf.mxu1  ;;  %v1349_v16 = vpop.f32.mrf.mxu0 }
 0x1fc   : > { %v1125_v26 = vadd.f32 %v1124_v53, %v3355_v56  ;;  %1738 = vxpose.xlu1.b32.cont [4/16] %v1479_v52, 128 }
 0x1fd   : > { %v1126_v41 = vpop.f32.mrf.mxu1  ;;  %v1351_v42 = vpop.f32.mrf.mxu0 }
 0x1fe   : > { %v1480_v59 = vadd.f32 %v1349_v16, %v1125_v26 }
 0x1ff   : > { %v1127_v37 = vpop.f32.mrf.mxu1  ;;  %v1352_v3 = vpop.f32.mrf.mxu0 }
 0x200   : > { %v1128_v21 = vadd.f32 %v1127_v37, %v3363_v55  ;;  %1739 = vxpose.xlu1.b32.cont [5/16] %v1480_v59, 128 }
 0x201   : > { %v1129_v22 = vpop.f32.mrf.mxu1  ;;  %v1354_v58 = vpop.f32.mrf.mxu0 }
 0x202   : > { %v1481_v38 = vadd.f32 %v1352_v3, %v1128_v21 }
 0x203   : > { %v1132_v15 = vpop.f32.mrf.mxu1  ;;  %v1357_v60 = vpop.f32.mrf.mxu0 }
 0x204   : > { %v1133_v20 = vadd.f32 %v1132_v15, %v3367_v31  ;;  %1740 = vxpose.xlu1.b32.cont [6/16] %v1481_v38, 128 }
 0x205   : > { %v1134_v47 = vpop.f32.mrf.mxu1  ;;  %v1359_v39 = vpop.f32.mrf.mxu0 }
 0x206   : > { %v1482_v56 = vadd.f32 %v1357_v60, %v1133_v20 }
 0x207   : > { %v1135_v51 = vpop.f32.mrf.mxu1  ;;  %v1360_v13 = vpop.f32.mrf.mxu0 }
 0x208   : > { %v1136_v7 = vadd.f32 %v1135_v51, %v3372_v49  ;;  %1741 = vxpose.xlu1.b32.cont [7/16] %v1482_v56, 128 }
 0x209   : > { %v1137_v36 = vpop.f32.mrf.mxu1  ;;  %v1362_v25 = vpop.f32.mrf.mxu0 }
 0x20a   : > { %v1483_v55 = vadd.f32 %v1360_v13, %v1136_v7 }
 0x20b   : > { %v1140_v35 = vpop.f32.mrf.mxu1  ;;  %v1365_v46 = vpop.f32.mrf.mxu0 }
 0x20c   : > { %v1141_v14 = vadd.f32 %v1140_v35, %v3179_v30  ;;  %1742 = vxpose.xlu1.b32.cont [8/16] %v1483_v55, 128 }
 0x20d   : > { %v1142_v44 = vpop.f32.mrf.mxu1  ;;  %v1367_v62 = vpop.f32.mrf.mxu0 }
 0x20e   : > { %v1484_v31 = vadd.f32 %v1365_v46, %v1141_v14 }
 0x20f   : > { %v1143_v50 = vpop.f32.mrf.mxu1  ;;  %v1368_v19 = vpop.f32.mrf.mxu0 }
 0x210   : > { %v1144_v2 = vadd.f32 %v1143_v50, %v3189_v9  ;;  %1743 = vxpose.xlu1.b32.cont [9/16] %v1484_v31, 128 }
 0x211   : > { %v1145_v34 = vpop.f32.mrf.mxu1  ;;  %v1370_v45 = vpop.f32.mrf.mxu0 }
 0x212   : > { %v1485_v49 = vadd.f32 %v1368_v19, %v1144_v2 }
 0x213   : > { %v1148_v40 = vpop.f32.mrf.mxu1  ;;  %v1373_v5 = vpop.f32.mrf.mxu0 }
 0x214   : > { %v1149_v17 = vadd.f32 %v1148_v40, %v3197_v27  ;;  %1744 = vxpose.xlu1.b32.cont [10/16] %v1485_v49, 128 }
 0x215   : > { %v1150_v29 = vpop.f32.mrf.mxu1  ;;  %v1375_v61 = vpop.f32.mrf.mxu0 }
 0x216   : > { %v1486_v30 = vadd.f32 %v1373_v5, %v1149_v17 }
 0x217   : > { %v1151_v52 = vpop.f32.mrf.mxu1  ;;  %v1376_v53 = vpop.f32.mrf.mxu0 }
 0x218   : > { %v1152_v16 = vadd.f32 %v1151_v52, %v3207_v32  ;;  %1745 = vxpose.xlu1.b32.cont [11/16] %v1486_v30, 128 }
 0x219   : > { %v1153_v26 = vpop.f32.mrf.mxu1  ;;  %v1378_v41 = vpop.f32.mrf.mxu0 }
 0x21a   : > { %v1487_v9 = vadd.f32 %v1376_v53, %v1152_v16 }
 0x21b   : > { %v1156_v42 = vpop.f32.mrf.mxu1  ;;  %v1381_v59 = vpop.f32.mrf.mxu0 }
 0x21c   : > { %v1157_v37 = vadd.f32 %v1156_v42, %v3215_v23  ;;  %1746 = vxpose.xlu1.b32.cont [12/16] %v1487_v9, 128 }
 0x21d   : > { %v1158_v3 = vpop.f32.mrf.mxu1  ;;  %v1383_v21 = vpop.f32.mrf.mxu0 }
 0x21e   : > { %v1488_v27 = vadd.f32 %v1381_v59, %v1157_v37 }
 0x21f   : > { %v1159_v22 = vpop.f32.mrf.mxu1  ;;  %v1384_v58 = vpop.f32.mrf.mxu0 }
 0x220   : > { %v1160_v38 = vadd.f32 %v1159_v22, %v3225_v0  ;;  %1747 = vxpose.xlu1.b32.cont [13/16] %v1488_v27, 128 }
 0x221   : > { %v1161_v15 = vpop.f32.mrf.mxu1  ;;  %v1386_v32 = vpop.f32.mrf.mxu0 }
 0x222   : > { %v1489_v60 = vadd.f32 %v1384_v58, %v1160_v38 }
 0x223   : > { %v1164_v20 = vpop.f32.mrf.mxu1  ;;  %v1389_v47 = vpop.f32.mrf.mxu0 }
 0x224   : > { %v1165_v39 = vadd.f32 %v1164_v20, %v3233_v4  ;;  %1748 = vxpose.xlu1.b32.cont [14/16] %v1489_v60, 128 }
 0x225   : > { %v1166_v56 = vpop.f32.mrf.mxu1  ;;  %v1391_v23 = vpop.f32.mrf.mxu0 }
 0x226   : > { %v1490_v51 = vadd.f32 %v1389_v47, %v1165_v39 }
 0x227   : > { %v1167_v13 = vpop.f32.mrf.mxu1  ;;  %v1392_v7 = vpop.f32.mrf.mxu0 }
 0x228   : > { %v1168_v36 = vadd.f32 %v1167_v13, %v3243_v6  ;;  %1749 = vxpose.xlu1.b32.cont [15/16] %v1490_v51, 128 }
 0x229   : > { %v1169_v25 = vpop.f32.mrf.mxu1  ;;  %v1394_v0 = vpop.f32.mrf.mxu0 }
 0x22a   : > { %v1491_v55 = vadd.f32 %v1392_v7, %v1168_v36 }
 0x22b   : > { %v1172_v35 = vpop.f32.mrf.mxu1  ;;  %v1397_v46 = vpop.f32.mrf.mxu0 }
 0x22c   : > { %v1173_v14 = vadd.f32 %v1172_v35, %v3251_v54  ;;  %1750 = vxpose.xlu1.b32.end [16/16] %v1491_v55, 128  ;;  %v1719_v44 = vpop.trf.xlu0 }
 0x22d   : > { %v1174_v4 = vpop.f32.mrf.mxu1  ;;  %v1399_v62 = vpop.f32.mrf.mxu0  ;;  %1799 = vst [vmem:[%s3410_s19] sm:$0xff] %v1719_v44 }
 0x22e   : > { %v1492_v31 = vadd.f32 %v1397_v46, %v1173_v14 }
 0x22f   : > { %v1175_v50 = vpop.f32.mrf.mxu1  ;;  %v1400_v6 = vpop.f32.mrf.mxu0 }
 0x230   : > { %v1176_v19 = vadd.f32 %v1175_v50, %v3261_v48  ;;  %1767 = vxpose.xlu0.b32.start [1/16] %v1492_v31, 128  ;;  %v1720_v2 = vpop.trf.xlu0 }
 0x231   : > { %v1177_v34 = vpop.f32.mrf.mxu1  ;;  %v1402_v45 = vpop.f32.mrf.mxu0  ;;  %1802 = vst [vmem:[%s3410_s19 + $0x18] sm:$0xff] %v1720_v2 }
 0x232   : > { %v1493_v54 = vadd.f32 %v1400_v6, %v1176_v19 }
 0x233   : > { %v1180_v49 = vpop.f32.mrf.mxu1  ;;  %v1405_v40 = vpop.f32.mrf.mxu0 }
 0x234   : > { %v1181_v5 = vadd.f32 %v1180_v49, %v3269_v12  ;;  %1768 = vxpose.xlu0.b32.cont [2/16] %v1493_v54, 128  ;;  %v1721_v17 = vpop.trf.xlu0 }
 0x235   : > { %v1182_v29 = vpop.f32.mrf.mxu1  ;;  %v1407_v61 = vpop.f32.mrf.mxu0  ;;  %1805 = vst [vmem:[%s3410_s19 + $0x30] sm:$0xff] %v1721_v17 }
 0x236   : > { %v1494_v30 = vadd.f32 %v1405_v40, %v1181_v5 }
 0x237   : > { %v1183_v52 = vpop.f32.mrf.mxu1  ;;  %v1408_v48 = vpop.f32.mrf.mxu0 }
 0x238   : > { %v1184_v53 = vadd.f32 %v1183_v52, %v3279_v10  ;;  %1769 = vxpose.xlu0.b32.cont [3/16] %v1494_v30, 128  ;;  %v1722_v16 = vpop.trf.xlu0 }
 0x239   : > { %v1185_v26 = vpop.f32.mrf.mxu1  ;;  %v1410_v41 = vpop.f32.mrf.mxu0  ;;  %1808 = vst [vmem:[%s3410_s19 + $0x48] sm:$0xff] %v1722_v16 }
 0x23a   : > { %v1495_v9 = vadd.f32 %v1408_v48, %v1184_v53 }
 0x23b   : > { %v1188_v42 = vpop.f32.mrf.mxu1  ;;  %v1413_v12 = vpop.f32.mrf.mxu0 }
 0x23c   : > { %v1189_v59 = vadd.f32 %v1188_v42, %v3287_v8  ;;  %1770 = vxpose.xlu0.b32.cont [4/16] %v1495_v9, 128  ;;  %v1723_v37 = vpop.trf.xlu0 }
 0x23d   : > { %v1190_v3 = vpop.f32.mrf.mxu1  ;;  %v1415_v21 = vpop.f32.mrf.mxu0  ;;  %1811 = vst [vmem:[%s3410_s19 + $0x60] sm:$0xff] %v1723_v37 }
 0x23e   : > { %v1496_v27 = vadd.f32 %v1413_v12, %v1189_v59 }
 0x23f   : > { %v1191_v22 = vpop.f32.mrf.mxu1  ;;  %v1416_v10 = vpop.f32.mrf.mxu0 }
 0x240   : > { %v1192_v58 = vadd.f32 %v1191_v22, %v3297_v57  ;;  %1771 = vxpose.xlu0.b32.cont [5/16] %v1496_v27, 128  ;;  %v1724_v38 = vpop.trf.xlu0 }
 0x241   : > { %v1193_v15 = vpop.f32.mrf.mxu1  ;;  %v1418_v32 = vpop.f32.mrf.mxu0  ;;  %1814 = vst [vmem:[%s3410_s19 + $0x78] sm:$0xff] %v1724_v38 }
 0x242   : > { %v1497_v60 = vadd.f32 %v1416_v10, %v1192_v58  ;;  %v3837_v58 = vld [vmem:[#allocation14_spill] sm:$0xff] }
 0x243   : > { %v1196_v20 = vpop.f32.mrf.mxu1  ;;  %v1421_v8 = vpop.f32.mrf.mxu0 }
 0x244   : > { %v1197_v47 = vadd.f32 %v1196_v20, %v3305_v63  ;;  %1772 = vxpose.xlu0.b32.cont [6/16] %v1497_v60, 128  ;;  %v1725_v39 = vpop.trf.xlu0 }
 0x245   : > { %v1198_v56 = vpop.f32.mrf.mxu1  ;;  %v1423_v23 = vpop.f32.mrf.mxu0  ;;  %1817 = vst [vmem:[%s3410_s19 + $0x90] sm:$0xff] %v1725_v39 }
 0x246   : > { %v1498_v51 = vadd.f32 %v1421_v8, %v1197_v47  ;;  %v3838_v47 = vld [vmem:[#allocation18_spill] sm:$0xff] }
 0x247   : > { %v1199_v13 = vpop.f32.mrf.mxu1  ;;  %v1424_v57 = vpop.f32.mrf.mxu0 }
 0x248   : > { %v1200_v7 = vadd.f32 %v1199_v13, %v3315_v18  ;;  %1773 = vxpose.xlu0.b32.cont [7/16] %v1498_v51, 128  ;;  %v1726_v36 = vpop.trf.xlu0 }
 0x249   : > { %v1201_v25 = vpop.f32.mrf.mxu1  ;;  %v1426_v0 = vpop.f32.mrf.mxu0  ;;  %1820 = vst [vmem:[%s3410_s19 + $0xa8] sm:$0xff] %v1726_v36 }
 0x24a   : > { %v1499_v55 = vadd.f32 %v1424_v57, %v1200_v7 }
 0x24b   : > { %v1204_v35 = vpop.f32.mrf.mxu1  ;;  %v1429_v63 = vpop.f32.mrf.mxu0 }
 0x24c   : > { %v1205_v46 = vadd.f32 %v1204_v35, %v3323_v43  ;;  %1774 = vxpose.xlu0.b32.cont [8/16] %v1499_v55, 128  ;;  %v1727_v14 = vpop.trf.xlu0 }
 0x24d   : > { %v1206_v44 = vpop.f32.mrf.mxu1  ;;  %v1431_v4 = vpop.f32.mrf.mxu0  ;;  %1823 = vst [vmem:[%s3410_s19 + $0xc0] sm:$0xff] %v1727_v14 }
 0x24e   : > { %v1500_v62 = vadd.f32 %v1429_v63, %v1205_v46 }
 0x24f   : > { %v1207_v31 = vpop.f32.mrf.mxu1  ;;  %v1432_v18 = vpop.f32.mrf.mxu0 }
 0x250   : > { %v1208_v50 = vadd.f32 %v1207_v31, %v3333_v11  ;;  %1775 = vxpose.xlu0.b32.cont [9/16] %v1500_v62, 128  ;;  %v1728_v6 = vpop.trf.xlu0 }
 0x251   : > { %v1209_v19 = vpop.f32.mrf.mxu1  ;;  %v1434_v2 = vpop.f32.mrf.mxu0  ;;  %1826 = vst [vmem:[%s3410_s19 + $0xd8] sm:$0xff] %v1728_v6 }
 0x252   : > { %v1501_v34 = vadd.f32 %v1432_v18, %v1208_v50 }
 0x253   : > { %v1212_v45 = vpop.f32.mrf.mxu1  ;;  %v1437_v43 = vpop.f32.mrf.mxu0 }
 0x254   : > { %v1213_v54 = vadd.f32 %v1212_v45, %v3341_v24  ;;  %1776 = vxpose.xlu0.b32.cont [10/16] %v1501_v34, 128  ;;  %v1729_v49 = vpop.trf.xlu0 }
 0x255   : > { %v1214_v40 = vpop.f32.mrf.mxu1  ;;  %v1439_v5 = vpop.f32.mrf.mxu0  ;;  %1829 = vst [vmem:[%s3410_s19 + $0xf0] sm:$0xff] %v1729_v49 }
 0x256   : > { %v1502_v17 = vadd.f32 %v1437_v43, %v1213_v54 }
 0x257   : > { %v1215_v29 = vpop.f32.mrf.mxu1  ;;  %v1440_v11 = vpop.f32.mrf.mxu0 }
 0x258   : > { %v1216_v61 = vadd.f32 %v1215_v29, %v3351_v1  ;;  %1777 = vxpose.xlu0.b32.cont [11/16] %v1502_v17, 128  ;;  %v1730_v30 = vpop.trf.xlu0 }
 0x259   : > { %v1217_v52 = vpop.f32.mrf.mxu1  ;;  %v1442_v48 = vpop.f32.mrf.mxu0  ;;  %1832 = vst [vmem:[%s3410_s19 + $0x108] sm:$0xff] %v1730_v30 }
 0x25a   : > { %v1503_v53 = vadd.f32 %v1440_v11, %v1216_v61 }
 0x25b   : > { %v1220_v16 = vpop.f32.mrf.mxu1  ;;  %v1445_v24 = vpop.f32.mrf.mxu0 }
 0x25c   : > { %v1221_v26 = vadd.f32 %v1220_v16, %v3357_v28  ;;  %1778 = vxpose.xlu0.b32.cont [12/16] %v1503_v53, 128  ;;  %v1731_v41 = vpop.trf.xlu0 }
 0x25d   : > { %v1222_v9 = vpop.f32.mrf.mxu1  ;;  %v1447_v42 = vpop.f32.mrf.mxu0  ;;  %1835 = vst [vmem:[%s3410_s19 + $0x120] sm:$0xff] %v1731_v41 }
 0x25e   : > { %v1504_v12 = vadd.f32 %v1445_v24, %v1221_v26 }
 0x25f   : > { %v1223_v59 = vpop.f32.mrf.mxu1  ;;  %v1448_v1 = vpop.f32.mrf.mxu0 }
 0x260   : > { %v1224_v37 = vadd.f32 %v1223_v59, %v3365_v33  ;;  %1779 = vxpose.xlu0.b32.cont [13/16] %v1504_v12, 128  ;;  %v1732_v3 = vpop.trf.xlu0 }
 0x261   : > { %v1225_v21 = vpop.f32.mrf.mxu1  ;;  %v1450_v27 = vpop.f32.mrf.mxu0  ;;  %1838 = vst [vmem:[%s3410_s19 + $0x138] sm:$0xff] %v1732_v3 }
 0x262   : > { %v1505_v22 = vadd.f32 %v1448_v1, %v1224_v37 }
 0x263   : > { %v1228_v10 = vpop.f32.mrf.mxu1  ;;  %v1453_v28 = vpop.f32.mrf.mxu0 }
 0x264   : > { %v1229_v38 = vadd.f32 %v1228_v10, %v3837_v58  ;;  %1780 = vxpose.xlu0.b32.cont [14/16] %v1505_v22, 128  ;;  %v1733_v15 = vpop.trf.xlu0 }
 0x265   : > { %v1230_v32 = vpop.f32.mrf.mxu1  ;;  %v1455_v60 = vpop.f32.mrf.mxu0  ;;  %1841 = vst [vmem:[%s3410_s19 + $0x150] sm:$0xff] %v1733_v15 }
 0x266   : > { %v1506_v20 = vadd.f32 %v1453_v28, %v1229_v38 }
 0x267   : > { %v1231_v33 = vpop.f32.mrf.mxu1  ;;  %v1456_v8 = vpop.f32.mrf.mxu0 }
 0x268   : > { %v1232_v39 = vadd.f32 %v1231_v33, %v3838_v47  ;;  %1781 = vxpose.xlu0.b32.cont [15/16] %v1506_v20, 128  ;;  %v1734_v56 = vpop.trf.xlu0 }
 0x269   : > { %v1233_v23 = vpop.f32.mrf.mxu1  ;;  %v1458_v51 = vpop.f32.mrf.mxu0  ;;  %1844 = vst [vmem:[%s3410_s19 + $0x168] sm:$0xff] %v1734_v56 }
 0x26a   : > { %v1507_v13 = vadd.f32 %v1456_v8, %v1232_v39 }
 0x26c   : > { %1782 = vxpose.xlu0.b32.end [16/16] %v1507_v13, 128  ;;  %v1751_v57 = vpop.trf.xlu1 }
 0x26d   : > { %1800 = vst [vmem:[%s3410_s19 + $0x8] sm:$0xff] %v1751_v57 }
 0x270   : > { %v1752_v7 = vpop.trf.xlu1 }
 0x271   : > { %1803 = vst [vmem:[%s3410_s19 + $0x20] sm:$0xff] %v1752_v7 }
 0x274   : > { %v1753_v36 = vpop.trf.xlu1 }
 0x275   : > { %1806 = vst [vmem:[%s3410_s19 + $0x38] sm:$0xff] %v1753_v36 }
 0x278   : > { %v1754_v25 = vpop.trf.xlu1 }
 0x279   : > { %1809 = vst [vmem:[%s3410_s19 + $0x50] sm:$0xff] %v1754_v25 }
 0x27c   : > { %v1755_v0 = vpop.trf.xlu1 }
 0x27d   : > { %1812 = vst [vmem:[%s3410_s19 + $0x68] sm:$0xff] %v1755_v0 }
 0x280   : > { %v1756_v55 = vpop.trf.xlu1 }
 0x281   : > { %1815 = vst [vmem:[%s3410_s19 + $0x80] sm:$0xff] %v1756_v55 }
 0x284   : > { %v1757_v35 = vpop.trf.xlu1 }
 0x285   : > { %1818 = vst [vmem:[%s3410_s19 + $0x98] sm:$0xff] %v1757_v35 }
 0x288   : > { %v1758_v63 = vpop.trf.xlu1 }
 0x289   : > { %1821 = vst [vmem:[%s3410_s19 + $0xb0] sm:$0xff] %v1758_v63 }
 0x28c   : > { %v1759_v46 = vpop.trf.xlu1 }
 0x28d   : > { %1824 = vst [vmem:[%s3410_s19 + $0xc8] sm:$0xff] %v1759_v46 }
 0x290   : > { %v1760_v14 = vpop.trf.xlu1 }
 0x291   : > { %1827 = vst [vmem:[%s3410_s19 + $0xe0] sm:$0xff] %v1760_v14 }
 0x294   : > { %v1761_v44 = vpop.trf.xlu1 }
 0x295   : > { %1830 = vst [vmem:[%s3410_s19 + $0xf8] sm:$0xff] %v1761_v44 }
 0x298   : > { %v1762_v4 = vpop.trf.xlu1 }
 0x299   : > { %1833 = vst [vmem:[%s3410_s19 + $0x110] sm:$0xff] %v1762_v4 }
 0x29c   : > { %v1763_v62 = vpop.trf.xlu1 }
 0x29d   : > { %1836 = vst [vmem:[%s3410_s19 + $0x128] sm:$0xff] %v1763_v62 }
 0x2a0   : > { %v1764_v31 = vpop.trf.xlu1 }
 0x2a1   : > { %1839 = vst [vmem:[%s3410_s19 + $0x140] sm:$0xff] %v1764_v31 }
 0x2a4   : > { %v1765_v18 = vpop.trf.xlu1 }
 0x2a5   : > { %1842 = vst [vmem:[%s3410_s19 + $0x158] sm:$0xff] %v1765_v18 }
 0x2a8   : > { %v1766_v50 = vpop.trf.xlu1 }
 0x2a9   : > { %1845 = vst [vmem:[%s3410_s19 + $0x170] sm:$0xff] %v1766_v50 }
 0x2ac   : > { %v1783_v6 = vpop.trf.xlu0 }
 0x2ad   : > { %1801 = vst [vmem:[%s3410_s19 + $0x10] sm:$0xff] %v1783_v6 }
 0x2b0   : > { %v1784_v19 = vpop.trf.xlu0 }
 0x2b1   : > { %1804 = vst [vmem:[%s3410_s19 + $0x28] sm:$0xff] %v1784_v19 }
 0x2b4   : > { %v1785_v2 = vpop.trf.xlu0 }
 0x2b5   : > { %1807 = vst [vmem:[%s3410_s19 + $0x40] sm:$0xff] %v1785_v2 }
 0x2b8   : > { %v1786_v34 = vpop.trf.xlu0 }
 0x2b9   : > { %1810 = vst [vmem:[%s3410_s19 + $0x58] sm:$0xff] %v1786_v34 }
 0x2bc   : > { %v1787_v45 = vpop.trf.xlu0 }
 0x2bd   : > { %1813 = vst [vmem:[%s3410_s19 + $0x70] sm:$0xff] %v1787_v45 }
 0x2c0   : > { %v1788_v43 = vpop.trf.xlu0 }
 0x2c1   : > { %1816 = vst [vmem:[%s3410_s19 + $0x88] sm:$0xff] %v1788_v43 }
 0x2c4   : > { %v1789_v54 = vpop.trf.xlu0 }
 0x2c5   : > { %1819 = vst [vmem:[%s3410_s19 + $0xa0] sm:$0xff] %v1789_v54 }
 0x2c8   : > { %v1790_v49 = vpop.trf.xlu0 }
 0x2c9   : > { %1822 = vst [vmem:[%s3410_s19 + $0xb8] sm:$0xff] %v1790_v49 }
 0x2cc   : > { %v1791_v40 = vpop.trf.xlu0 }
 0x2cd   : > { %1825 = vst [vmem:[%s3410_s19 + $0xd0] sm:$0xff] %v1791_v40 }
 0x2d0   : > { %v1792_v5 = vpop.trf.xlu0 }
 0x2d1   : > { %1828 = vst [vmem:[%s3410_s19 + $0xe8] sm:$0xff] %v1792_v5 }
 0x2d4   : > { %v1793_v17 = vpop.trf.xlu0 }
 0x2d5   : > { %1831 = vst [vmem:[%s3410_s19 + $0x100] sm:$0xff] %v1793_v17 }
 0x2d8   : > { %v1794_v29 = vpop.trf.xlu0 }
 0x2d9   : > { %1834 = vst [vmem:[%s3410_s19 + $0x118] sm:$0xff] %v1794_v29 }
 0x2dc   : > { %v1795_v11 = vpop.trf.xlu0 }
 0x2dd   : > { %1837 = vst [vmem:[%s3410_s19 + $0x130] sm:$0xff] %v1795_v11 }
 0x2e0   : > { %v1796_v61 = vpop.trf.xlu0 }
 0x2e1   : > { %1840 = vst [vmem:[%s3410_s19 + $0x148] sm:$0xff] %v1796_v61 }
 0x2e4   : > { %v1797_v30 = vpop.trf.xlu0 }
 0x2e5   : > { %1843 = vst [vmem:[%s3410_s19 + $0x160] sm:$0xff] %v1797_v30 }
 0x2e8   : > { %v1798_v52 = vpop.trf.xlu0 }
 0x2e9   : > { %1846 = vst [vmem:[%s3410_s19 + $0x178] sm:$0xff] %v1798_v52 }
 0x2ea   : > { %2166 = shalt.err (!%p2163_p0)
}
 0x2eb   : > { %s2167_s4 = scalar_lea.hbm %s3479_s25, 6144  ;;  %s2171_s5 = scalar_lea.hbm %s3532_s2, 12288 }
 0x2ec   : > { %p2168_p1 = scmp.ne.s32.totalorder %s3479_s25, %s2167_s4  ;;  %p2172_p9 = scmp.lt.s32.totalorder %s3479_s25, %s3532_s2 }
 0x2ed   : > { %p2173_p11 = scmp.lt.s32.totalorder %s2171_s5, %s2167_s4 }
 0x2ee   : > { %p2169_p5 = pnand %p2168_p1, %p3839_p12 }
 0x2ef   : > { %p2174_p13 = por %p2173_p11, %p2172_p9 }
 0x2f0   : > { %p2170_p7 = pneg %p2169_p5 }
 0x2f2   : > { %p2175_p3 = pnand %p2174_p13, %p2170_p7 }
 0x2f4   : > { %2178 = shalt.err (!%p2175_p3)
}
 0x2f5   : > { %s2247_s18 = smov 384   ;;  %s2248_s17 = smov 24  }
 0x2f6   : > { %2023 = dma.vmem_to_hbm [thread:$0]  (%p3839_p12), %s3481_s26, 6144, %s3479_s25, %s1848_s28, %s2247_s18, %s2247_s18, %s2248_s17  }
 0x2f7 PF: > { %s3840_s19 = sld [smem:[#allocation12_spill]]  ;;  %s1879_s22 = sand.u32 1, %s2217_s9  }
 0x2f8   : > { %p3841_p2 = scmp.ne.s32.totalorder %s3647_s21, 0  ;;  %s1880_s29 = scalar_lea.sflag [#allocation5], %s1879_s22 }
 0x2fd   : > { %p3842_p4 = scmp.ge.s32.totalorder %s3840_s19, 2 }
 0x2ff   : > { %p2034_p6 = pnand %p3842_p4, %p3841_p2 }
 0x301   : > { %p2035_p8 = pneg %p2034_p6 }
 0x303   : > { %2212 = dma.done.wait (%p2035_p8), %s1880_s29, 6144  }
 0x304   : > { %2214 = vsyncadd (%p2035_p8), %s1880_s29, 4294961152  ;;  %s19_s23 = sadd.s32 1, %s3840_s19   ;;  %s3843_s9 = smov %s2221_s10 }
 0x305   : > { %p16_p10 = scmp.ge.s32.totalorder %s19_s23, 4   ;;  %s3844_s10 = smov %s2225_s11 }
 0x306   : > { %s3845_s11 = smov %s2366_s14  ;;  %s3846_s12 = smov %s2233_s13 }
 0x307   : > { %s3847_s13 = smov %s3850_s27  ;;  %s3848_s14 = smov %s19_s23 }
 0x308   :  { %18 = sbr.rel (!%p16_p10) target bundleno = 7 (0x7), region = 86 }
 0x30d   :  { %1885 = vsyncpa [#allocation4], 1 }
 0x30e   :  { %1887 = vsyncpa [#allocation4 + $0x1], 1 }
 0x30f   :  { %1888 = vsyncpa [#allocation7], 1 }
 0x310   :  { %1889 = vsyncpa [#allocation5], 1 }
 0x311   :  { %1891 = vsyncpa [#allocation5 + $0x1], 1 }

</bundles_post_ra>
